<compile_context>
chip_gen: v6e
topology: v6e:2x2x1
jax: 0.10.0
libtpu: 0.0.40
codegen_flags: <defaults>
</compile_context>

<pallas_src>
import functools
import math

import jax
import jax.numpy as jnp
import numpy as np
from jax import lax
from jax.experimental import pallas as pl
from jax.experimental.pallas import tpu as pltpu


def _round_up(x, m):
    return ((x + m - 1) // m) * m


# ----------------------------- pass 1 ---------------------------------------
def _arcface_pass1_kernel(marg_ref, t_in_ref, tgt_ref, feat_ref, w_rows_hbm,
                          fnorm_ref, ctm_ref, ftl_ref, tnew_ref,
                          wbuf, sem):
    B = feat_ref.shape[0]

    # Gather the B target rows of the (C, D_pad) f32 normalized weight from HBM.
    for i in range(B):
        pltpu.make_async_copy(
            w_rows_hbm.at[pl.ds(tgt_ref[i], 1), :],
            wbuf.at[pl.ds(i, 1), :],
            sem.at[i]).start()

    cos_m = marg_ref[0]
    sin_m = marg_ref[1]
    threshold = marg_ref[2]
    mm = marg_ref[3]
    t_old = t_in_ref[0]

    # F.normalize(features, dim=1, eps=1e-12), computed ONCE for all C tiles.
    f = feat_ref[...]
    inv_norm = lax.rsqrt(jnp.maximum(jnp.sum(f * f, axis=-1, keepdims=True), 1e-24))
    f = f * inv_norm
    fnorm_ref[...] = f.astype(jnp.bfloat16)      # bf16 copy consumed by pass-2 MXU

    for i in range(B):
        pltpu.make_async_copy(
            w_rows_hbm.at[pl.ds(0, 1), :],
            wbuf.at[pl.ds(i, 1), :],
            sem.at[i]).wait()

    # target_logit in full f32 (matches the PyTorch reference path).
    target_logit = jnp.sum(f * wbuf[...], axis=-1, keepdims=True)     # (B, 1)
    target_logit = jnp.clip(target_logit, -1.0, 1.0)

    sin_theta = jnp.sqrt(jnp.maximum(1.0 - target_logit * target_logit, 0.0))
    cos_theta_m = target_logit * cos_m - sin_theta * sin_m
    final_target_logit = jnp.where(target_logit > threshold,
                                   cos_theta_m, target_logit - mm)

    # Running-buffer update; the hard-example reweighting in pass 2 uses the
    # UPDATED t, exactly as in the PyTorch source.
    t_new = jnp.mean(target_logit) * 0.01 + 0.99 * t_old

    ctm_ref[...] = cos_theta_m
    ftl_ref[...] = final_target_logit
    tnew_ref[...] = jnp.reshape(t_new, (1, 1))


# ----------------------------- pass 2 ---------------------------------------
def _arcface_pass2_kernel(tgt_ref, f_ref, w_ref, ctm_ref, ftl_ref, t_ref,
                          logits_ref, *, scale):
    tile_c = logits_ref.shape[1]
    B = logits_ref.shape[0]
    j = pl.program_id(0)

    # bf16 x bf16 MXU matmul with f32 accumulation; weight stays bf16 (no upcast).
    cos_theta = lax.dot_general(f_ref[...], w_ref[...],
                                (((1,), (0,)), ((), ())),
                                preferred_element_type=jnp.float32)
    cos_theta = jnp.clip(cos_theta, -1.0, 1.0)                        # (B, tile_c)

    # local iota + tile offset instead of a global column iota
    col = lax.broadcasted_iota(jnp.int32, (B, tile_c), 1) + j * tile_c
    onehot = col == tgt_ref[...]                                      # (B,1) bcast

    t_new = t_ref[0, 0]
    mask = cos_theta > ctm_ref[...]
    cos_theta = jnp.where(mask, cos_theta * (t_new + cos_theta), cos_theta)
    cos_theta = jnp.where(onehot, ftl_ref[...], cos_theta)

    logits_ref[...] = cos_theta * scale


# ----------------------------- jitted forward --------------------------------
@functools.partial(jax.jit, static_argnames=("scale", "num_classes", "tile_c"))
def _arcface_forward(features, w_rows, w_nt, targets, margin_table, t, step,
                     *, scale, num_classes, tile_c):
    B, D = features.shape
    D_pad, C_pad = w_nt.shape
    num_tiles = C_pad // tile_c

    feats = features.astype(jnp.float32)
    if D != D_pad:
        feats = jnp.pad(feats, ((0, 0), (0, D_pad - D)))

    # Margin schedule lookup on device (no per-step host scalar construction).
    nsteps = margin_table.shape[0]
    idx = jnp.minimum(step, nsteps - 1)
    msc = lax.dynamic_index_in_dim(margin_table, idx, axis=0, keepdims=False)  # (4,)

    tgt = targets.astype(jnp.int32)

    # pass 1: normalize features, gather target rows, per-row scalars, t update.
    fnorm, ctm, ftl, tnew = pl.pallas_call(
        _arcface_pass1_kernel,
        out_shape=(jax.ShapeDtypeStruct((B, D_pad), jnp.bfloat16),
                   jax.ShapeDtypeStruct((B, 1), jnp.float32),
                   jax.ShapeDtypeStruct((B, 1), jnp.float32),
                   jax.ShapeDtypeStruct((1, 1), jnp.float32)),
        in_specs=[pl.BlockSpec(memory_space=pltpu.MemorySpace.SMEM),   # margin (4,)
                  pl.BlockSpec(memory_space=pltpu.MemorySpace.SMEM),   # t (1,)
                  pl.BlockSpec(memory_space=pltpu.MemorySpace.SMEM),   # targets (B,)
                  pl.BlockSpec(memory_space=pltpu.MemorySpace.VMEM),   # features
                  pl.BlockSpec(memory_space=pl.ANY)],                  # w_rows (HBM)
        out_specs=(pl.BlockSpec(memory_space=pltpu.MemorySpace.VMEM),
                   pl.BlockSpec(memory_space=pltpu.MemorySpace.VMEM),
                   pl.BlockSpec(memory_space=pltpu.MemorySpace.VMEM),
                   pl.BlockSpec(memory_space=pltpu.MemorySpace.VMEM)),
        scratch_shapes=[pltpu.VMEM((B, D_pad), jnp.float32),
                        pltpu.SemaphoreType.DMA((B,))],
    )(msc, t, tgt, feats, w_rows)

    # pass 2: C-tiled streaming matmul + elementwise tail (double-buffered weight).
    logits_pad = pl.pallas_call(
        functools.partial(_arcface_pass2_kernel, scale=float(scale)),
        out_shape=jax.ShapeDtypeStruct((B, C_pad), jnp.float32),
        grid=(num_tiles,),
        in_specs=[pl.BlockSpec((B, 1), lambda j: (0, 0)),             # targets (B,1)
                  pl.BlockSpec((B, D_pad), lambda j: (0, 0)),         # f_norm bf16
                  pl.BlockSpec((D_pad, tile_c), lambda j: (0, j)),    # weight tile bf16
                  pl.BlockSpec((B, 1), lambda j: (0, 0)),             # cos_theta_m
                  pl.BlockSpec((B, 1), lambda j: (0, 0)),             # final_target_logit
                  pl.BlockSpec((1, 1), lambda j: (0, 0))],            # t_new
        out_specs=pl.BlockSpec((B, tile_c), lambda j: (0, j)),
        compiler_params=pltpu.CompilerParams(
            dimension_semantics=("parallel",)),
        cost_estimate=pl.CostEstimate(
            flops=2 * B * D_pad * C_pad,
            transcendentals=0,
            bytes_accessed=D_pad * C_pad * 2 + B * C_pad * 4 + B * D_pad * 2),
    )(tgt.reshape(B, 1), fnorm, w_nt, ctm, ftl, tnew)

    logits = logits_pad[:, :num_classes]
    return logits, jnp.reshape(tnew, (1,)), step + 1


@jax.jit
def _ce_loss(logits, targets):
    logp = jax.nn.log_softmax(logits, axis=-1)
    nll = -jnp.take_along_axis(logp, targets.reshape(-1, 1), axis=-1)
    return jnp.mean(nll)


# ----------------------------- module wrapper --------------------------------
class ArcfaceLinearSchedulerPallas:
    """Python-side state (scheduler table, device-resident t / step counter, weight)."""

    def __init__(self, in_feat=1664, num_classes=3097, scale=35, dropout_rate=0.2,
                 weight=1.0, start_value=0.0, stop_value=0.3, nr_steps=60000.0,
                 tile_c=None, key=None, training=False):
        if key is None:
            key = jax.random.PRNGKey(0)
        self.in_feat = in_feat
        self.num_classes = num_classes
        self._s = float(scale)
        self.weight_loss = weight
        self.training = training
        self.dropout_rate = dropout_rate

        # nn.init.kaiming_uniform_(W, a=sqrt(1)) -> U(-b, b), b = sqrt(6/((1+a^2)*fan_in))
        bound = math.sqrt(6.0 / ((1.0 + 1.0) * in_feat))
        self.weight = jax.random.uniform(key, (num_classes, in_feat),
                                         jnp.float32, -bound, bound)

        # L2-normalize rows ONCE (the weight is a constant parameter here).
        wn = self.weight / jnp.maximum(
            jnp.sqrt(jnp.sum(self.weight * self.weight, axis=1, keepdims=True)), 1e-12)

        D_pad = _round_up(in_feat, 128)
        c128 = _round_up(num_classes, 128)
        if tile_c is None:
            budget = 8 * 1024 * 1024                       # double-buffered weight tile budget
            tc = (budget // (2 * D_pad * 2) // 128) * 128
            tile_c = max(128, min(1024, tc))               # cap for vreg pressure at B~8
        tile_c = min(max(128, _round_up(tile_c, 128)), c128)
        C_pad = _round_up(c128, tile_c)
        self.tile_c = int(tile_c)
        self.D_pad = D_pad
        self.C_pad = C_pad

        # (C, D_pad) f32 copy used only for the tiny pass-1 target-row DMA gather.
        self.w_rows = jnp.pad(wn, ((0, 0), (0, D_pad - in_feat)))
        # (D_pad, C_pad) bf16 transposed copy streamed tile-by-tile in pass 2.
        wn_bf16 = wn.astype(jnp.bfloat16)
        self.w_nt = jnp.zeros((D_pad, C_pad), jnp.bfloat16).at[
            :in_feat, :num_classes].set(wn_bf16.T)

        # Full margin schedule on device: rows = [cos_m, sin_m, cos(pi-m), sin(pi-m)*m].
        drop = np.linspace(start=start_value, stop=stop_value, num=int(nr_steps))
        table = np.stack([np.cos(drop), np.sin(drop),
                          np.cos(np.pi - drop), np.sin(np.pi - drop) * drop],
                         axis=1).astype(np.float32)
        self.margin_table = jnp.asarray(table)
        self.drop_values = drop

        self.t = jnp.zeros((1,), jnp.float32)              # device-resident running buffer
        self.step_count = jnp.zeros((), jnp.int32)         # device-resident scheduler step

    def __call__(self, features, targets):
        # NOTE: batch is assumed to contain only valid rows with targets in [0, C).
        tgt = jnp.asarray(targets, jnp.int32)
        logits, t_new, step_new = _arcface_forward(
            jnp.asarray(features, jnp.float32), self.w_rows, self.w_nt, tgt,
            self.margin_table, self.t, self.step_count,
            scale=self._s, num_classes=self.num_classes, tile_c=self.tile_c)
        self.t = t_new                 # stays on device; no host sync
        self.step_count = step_new
        if self.training:
            # TODO(synk): training-mode stochastic dropout (p=dropout_rate) not replicated;
            # eval-mode dropout is the identity, which is what the kernel implements.
            return _ce_loss(logits, tgt) * self.weight_loss
        return logits


# ----------------------------- demo / self-check -----------------------------
def _reference_forward(W, features, targets, marg_row, t_old, scale):
    """Pure-JAX reference of the eval path (bf16 weights/features in the matmul)."""
    cos_m, sin_m, threshold, mm = [float(x) for x in np.asarray(marg_row)]
    wn = W / jnp.maximum(jnp.sqrt(jnp.sum(W * W, axis=1, keepdims=True)), 1e-12)
    f = features / jnp.maximum(
        jnp.sqrt(jnp.sum(features * features, axis=1, keepdims=True)), 1e-12)
    wb = wn.astype(jnp.bfloat16).astype(jnp.float32)
    fb = f.astype(jnp.bfloat16).astype(jnp.float32)
    cos_theta = jnp.clip(fb @ wb.T, -1.0, 1.0)
    target_logit = jnp.clip(jnp.sum(f * wn[targets], axis=1, keepdims=True), -1.0, 1.0)
    sin_theta = jnp.sqrt(jnp.maximum(1.0 - target_logit ** 2, 0.0))
    cos_theta_m = target_logit * cos_m - sin_theta * sin_m
    mask = cos_theta > cos_theta_m
    ftl = jnp.where(target_logit > threshold, cos_theta_m, target_logit - mm)
    t_new = jnp.mean(target_logit) * 0.01 + 0.99 * t_old
    cos_theta = jnp.where(mask, cos_theta * (t_new + cos_theta), cos_theta)
    onehot = jax.nn.one_hot(targets, cos_theta.shape[1], dtype=jnp.bool_)
    cos_theta = jnp.where(onehot, ftl, cos_theta)
    return cos_theta * scale, t_new


if __name__ == "__main__":
    B, in_feat, num_classes = 8, 128, 512
    key = jax.random.PRNGKey(0)
    kf, kt, kw = jax.random.split(key, 3)

    features = jax.random.normal(kf, (B, in_feat), jnp.float32)
    targets = jax.random.randint(kt, (B,), 0, num_classes, jnp.int32)

    module = ArcfaceLinearSchedulerPallas(
        in_feat=in_feat, num_classes=num_classes, scale=35, dropout_rate=0.2,
        weight=1.0, start_value=0.0, stop_value=0.3, nr_steps=60000.0,
        tile_c=128,                 # small tile so the demo exercises a 4-step C grid
        key=kw, training=False)

    # Two scheduler steps: exercises the margin schedule + on-device t update
    # without any host readback of t or of the step counter.
    logits1 = module(features, targets)
    logits2 = module(features, targets)
    jax.block_until_ready(logits2)
    jax.block_until_ready(module.t)

    assert logits2.shape == (B, num_classes)
    assert bool(jnp.all(jnp.isfinite(logits1)))
    assert bool(jnp.all(jnp.isfinite(logits2)))
    assert module.t.shape == (1,) and bool(jnp.all(jnp.isfinite(module.t)))

    # Cross-check against the pure-JAX reference (same bf16 weight quantization).
    table = np.asarray(module.margin_table)
    t_ref = jnp.zeros((1,), jnp.float32)
    _, t_ref = _reference_forward(module.weight, features, targets, table[0],
                                  t_ref, module._s)
    ref2, t_ref = _reference_forward(module.weight, features, targets, table[1],
                                     t_ref, module._s)
    err = float(jnp.mean(jnp.abs(logits2 - ref2)))
    terr = float(jnp.abs(module.t - t_ref)[0])
    assert err < 2e-2, f"mean |logits - ref| too large: {err}"
    assert terr < 1e-4, f"|t - t_ref| too large: {terr}"

    print("KERNEL_OK")
</pallas_src>

<mosaic_0001>
module attributes {stable_mosaic.version = 11 : i64} {
  func.func @_arcface_pass2_kernel(%arg0: i32, %arg1: memref<8x1xi32, #tpu.memory_space<vmem>>, %arg2: memref<8x128xbf16, #tpu.memory_space<vmem>>, %arg3: memref<128x128xbf16, #tpu.memory_space<vmem>>, %arg4: memref<8x1xf32, #tpu.memory_space<vmem>>, %arg5: memref<8x1xf32, #tpu.memory_space<vmem>>, %arg6: memref<1x1xf32, #tpu.memory_space<vmem>>, %arg7: memref<8x128xf32, #tpu.memory_space<vmem>>) attributes {dimension_semantics = [#tpu.dimension_semantics<parallel>], iteration_bounds = array<i64: 4>, scalar_prefetch = 0 : i64, scratch_operands = 0 : i64, tpu.core_type = #tpu.core_type<tc>, window_params = [{pipeline_mode = #tpu.pipeline_mode<synchronous>, transform_indices = @transform_0, window_bounds = array<i64: 8, 1>}, {pipeline_mode = #tpu.pipeline_mode<synchronous>, transform_indices = @transform_1, window_bounds = array<i64: 8, 128>}, {transform_indices = @transform_2, window_bounds = array<i64: 128, 128>}, {pipeline_mode = #tpu.pipeline_mode<synchronous>, transform_indices = @transform_3, window_bounds = array<i64: 8, 1>}, {pipeline_mode = #tpu.pipeline_mode<synchronous>, transform_indices = @transform_4, window_bounds = array<i64: 8, 1>}, {pipeline_mode = #tpu.pipeline_mode<synchronous>, transform_indices = @transform_5, window_bounds = array<i64: 1, 1>}, {transform_indices = @transform_6, window_bounds = array<i64: 8, 128>}]} {
    %c0 = arith.constant 0 : index
    %c0_0 = arith.constant 0 : index
    %0 = vector.load %arg2[%c0, %c0_0] : memref<8x128xbf16, #tpu.memory_space<vmem>>, vector<8x128xbf16>
    %c0_1 = arith.constant 0 : index
    %c0_2 = arith.constant 0 : index
    %1 = vector.load %arg3[%c0_1, %c0_2] : memref<128x128xbf16, #tpu.memory_space<vmem>>, vector<128x128xbf16>
    %cst = arith.constant dense<0.000000e+00> : vector<8x128xf32>
    %2 = tpu.matmul %0, %1, %cst {dimension_numbers = #tpu.dot_dimension_numbers<[1], [0], [0], [1], [0, 0, 1, 1], [], []>} : vector<8x128xbf16>, vector<128x128xbf16>, vector<8x128xf32> -> vector<8x128xf32>
    %cst_3 = arith.constant -1.000000e+00 : f32
    %cst_4 = arith.constant 1.000000e+00 : f32
    %3 = vector.broadcast %cst_3 : f32 to vector<8x128xf32>
    %4 = arith.maximumf %3, %2 : vector<8x128xf32>
    %5 = vector.broadcast %cst_4 : f32 to vector<8x128xf32>
    %6 = arith.minimumf %5, %4 : vector<8x128xf32>
    %7 = tpu.iota {dimensions = array<i32: 1>} : vector<8x128xi32>
    %c128_i32 = arith.constant 128 : i32
    %8 = arith.muli %arg0, %c128_i32 : i32
    %9 = vector.broadcast %8 : i32 to vector<8x128xi32>
    %10 = arith.addi %7, %9 : vector<8x128xi32>
    %c0_5 = arith.constant 0 : index
    %c0_6 = arith.constant 0 : index
    %11 = vector.load %arg1[%c0_5, %c0_6] : memref<8x1xi32, #tpu.memory_space<vmem>>, vector<8x1xi32>
    %12 = vector.broadcast %11 : vector<8x1xi32> to vector<8x128xi32>
    %13 = arith.cmpi eq, %10, %12 : vector<8x128xi32>
    %c0_7 = arith.constant 0 : index
    %c0_8 = arith.constant 0 : index
    %14 = vector.load %arg6[%c0_7, %c0_8] : memref<1x1xf32, #tpu.memory_space<vmem>>, vector<1x1xf32>
    %15 = vector.extract %14[0, 0] : f32 from vector<1x1xf32>
    %c0_9 = arith.constant 0 : index
    %c0_10 = arith.constant 0 : index
    %16 = vector.load %arg4[%c0_9, %c0_10] : memref<8x1xf32, #tpu.memory_space<vmem>>, vector<8x1xf32>
    %17 = vector.broadcast %16 : vector<8x1xf32> to vector<8x128xf32>
    %18 = arith.cmpf ogt, %6, %17 : vector<8x128xf32>
    %19 = vector.broadcast %15 : f32 to vector<8x128xf32>
    %20 = arith.addf %19, %6 : vector<8x128xf32>
    %21 = arith.mulf %6, %20 : vector<8x128xf32>
    %22 = arith.select %18, %21, %6 : vector<8x128xi1>, vector<8x128xf32>
    %c0_11 = arith.constant 0 : index
    %c0_12 = arith.constant 0 : index
    %23 = vector.load %arg5[%c0_11, %c0_12] : memref<8x1xf32, #tpu.memory_space<vmem>>, vector<8x1xf32>
    %24 = vector.shape_cast %23 : vector<8x1xf32> to vector<8x1xf32>
    %25 = vector.broadcast %24 : vector<8x1xf32> to vector<8x128xf32>
    %26 = arith.select %13, %25, %22 : vector<8x128xi1>, vector<8x128xf32>
    %cst_13 = arith.constant 3.500000e+01 : f32
    %27 = vector.broadcast %cst_13 : f32 to vector<8x128xf32>
    %28 = arith.mulf %26, %27 : vector<8x128xf32>
    %c0_14 = arith.constant 0 : index
    %c0_15 = arith.constant 0 : index
    %29 = vector.load %arg7[%c0_14, %c0_15] : memref<8x128xf32, #tpu.memory_space<vmem>>, vector<8x128xf32>
    tpu.vector_store %arg7[%c0_14, %c0_15], %28 {strides = array<i32>} : memref<8x128xf32, #tpu.memory_space<vmem>>, vector<8x128xf32>,
    return
  }
  func.func @transform_0(%arg0: i32) -> (i32, i32) {
    %c0_i32 = arith.constant 0 : i32
    %c0_i32_0 = arith.constant 0 : i32
    %c0_i32_1 = arith.constant 0 : i32
    return %c0_i32, %c0_i32_0 : i32, i32
  }
  func.func @transform_1(%arg0: i32) -> (i32, i32) {
    %c0_i32 = arith.constant 0 : i32
    %c0_i32_0 = arith.constant 0 : i32
    %c0_i32_1 = arith.constant 0 : i32
    return %c0_i32, %c0_i32_0 : i32, i32
  }
  func.func @transform_2(%arg0: i32) -> (i32, i32) {
    %c0_i32 = arith.constant 0 : i32
    %c0_i32_0 = arith.constant 0 : i32
    return %c0_i32, %arg0 : i32, i32
  }
  func.func @transform_3(%arg0: i32) -> (i32, i32) {
    %c0_i32 = arith.constant 0 : i32
    %c0_i32_0 = arith.constant 0 : i32
    %c0_i32_1 = arith.constant 0 : i32
    return %c0_i32, %c0_i32_0 : i32, i32
  }
  func.func @transform_4(%arg0: i32) -> (i32, i32) {
    %c0_i32 = arith.constant 0 : i32
    %c0_i32_0 = arith.constant 0 : i32
    %c0_i32_1 = arith.constant 0 : i32
    return %c0_i32, %c0_i32_0 : i32, i32
  }
  func.func @transform_5(%arg0: i32) -> (i32, i32) {
    %c0_i32 = arith.constant 0 : i32
    %c0_i32_0 = arith.constant 0 : i32
    %c0_i32_1 = arith.constant 0 : i32
    return %c0_i32, %c0_i32_0 : i32, i32
  }
  func.func @transform_6(%arg0: i32) -> (i32, i32) {
    %c0_i32 = arith.constant 0 : i32
    %c0_i32_0 = arith.constant 0 : i32
    return %c0_i32, %arg0 : i32, i32
  }
}

module attributes {stable_mosaic.version = 11 : i64} {
  func.func @_arcface_pass1_kernel(%arg0: memref<4xf32, #tpu.memory_space<smem>>, %arg1: memref<1xf32, #tpu.memory_space<smem>>, %arg2: memref<8xi32, #tpu.memory_space<smem>>, %arg3: memref<8x128xf32, #tpu.memory_space<vmem>>, %arg4: memref<512x128xf32, #tpu.memory_space<any>>, %arg5: memref<8x128xbf16, #tpu.memory_space<vmem>>, %arg6: memref<8x1xf32, #tpu.memory_space<vmem>>, %arg7: memref<8x1xf32, #tpu.memory_space<vmem>>, %arg8: memref<1x1xf32, #tpu.memory_space<vmem>>, %arg9: memref<8x128xf32, #tpu.memory_space<vmem>>, %arg10: memref<8x!tpu.dma_semaphore, #tpu.memory_space<semaphore_mem>>) attributes {dimension_semantics = [], scalar_prefetch = 0 : i64, scratch_operands = 2 : i64, tpu.core_type = #tpu.core_type<tc>} {
    %c0 = arith.constant 0 : index
    %0 = memref.load %arg2[%c0] : memref<8xi32, #tpu.memory_space<smem>>
    %c0_i32 = arith.constant 0 : i32
    %c0_i32_0 = arith.constant 0 : i32
    %1 = tpu.memref_slice %arg4[%0, %c0_i32_0] : memref<512x128xf32, #tpu.memory_space<any>> -> memref<1x128xf32, #tpu.memory_space<any>>
    %c0_i32_1 = arith.constant 0 : i32
    %c0_i32_2 = arith.constant 0 : i32
    %2 = tpu.memref_slice %arg9[%c0_i32_1, %c0_i32_2] : memref<8x128xf32, #tpu.memory_space<vmem>> -> memref<1x128xf32, #tpu.memory_space<vmem>>
    %3 = tpu.memref_slice %arg10[%c0_i32] : memref<8x!tpu.dma_semaphore, #tpu.memory_space<semaphore_mem>> -> memref<1x!tpu.dma_semaphore, #tpu.memory_space<semaphore_mem>>
    %4 = tpu.memref_squeeze %3 : memref<1x!tpu.dma_semaphore, #tpu.memory_space<semaphore_mem>> -> memref<!tpu.dma_semaphore, #tpu.memory_space<semaphore_mem>>
    tpu.enqueue_dma source(%1 : memref<1x128xf32, #tpu.memory_space<any>>) target(%2 : memref<1x128xf32, #tpu.memory_space<vmem>>) target_semaphore(%4 : memref<!tpu.dma_semaphore, #tpu.memory_space<semaphore_mem>>)
    %c1 = arith.constant 1 : index
    %5 = memref.load %arg2[%c1] : memref<8xi32, #tpu.memory_space<smem>>
    %c1_i32 = arith.constant 1 : i32
    %c0_i32_3 = arith.constant 0 : i32
    %6 = tpu.memref_slice %arg4[%5, %c0_i32_3] : memref<512x128xf32, #tpu.memory_space<any>> -> memref<1x128xf32, #tpu.memory_space<any>>
    %c1_i32_4 = arith.constant 1 : i32
    %c0_i32_5 = arith.constant 0 : i32
    %7 = tpu.memref_slice %arg9[%c1_i32_4, %c0_i32_5] : memref<8x128xf32, #tpu.memory_space<vmem>> -> memref<1x128xf32, #tpu.memory_space<vmem>>
    %8 = tpu.memref_slice %arg10[%c1_i32] : memref<8x!tpu.dma_semaphore, #tpu.memory_space<semaphore_mem>> -> memref<1x!tpu.dma_semaphore, #tpu.memory_space<semaphore_mem>>
    %9 = tpu.memref_squeeze %8 : memref<1x!tpu.dma_semaphore, #tpu.memory_space<semaphore_mem>> -> memref<!tpu.dma_semaphore, #tpu.memory_space<semaphore_mem>>
    tpu.enqueue_dma source(%6 : memref<1x128xf32, #tpu.memory_space<any>>) target(%7 : memref<1x128xf32, #tpu.memory_space<vmem>>) target_semaphore(%9 : memref<!tpu.dma_semaphore, #tpu.memory_space<semaphore_mem>>)
    %c2 = arith.constant 2 : index
    %10 = memref.load %arg2[%c2] : memref<8xi32, #tpu.memory_space<smem>>
    %c2_i32 = arith.constant 2 : i32
    %c0_i32_6 = arith.constant 0 : i32
    %11 = tpu.memref_slice %arg4[%10, %c0_i32_6] : memref<512x128xf32, #tpu.memory_space<any>> -> memref<1x128xf32, #tpu.memory_space<any>>
    %c2_i32_7 = arith.constant 2 : i32
    %c0_i32_8 = arith.constant 0 : i32
    %12 = tpu.memref_slice %arg9[%c2_i32_7, %c0_i32_8] : memref<8x128xf32, #tpu.memory_space<vmem>> -> memref<1x128xf32, #tpu.memory_space<vmem>>
    %13 = tpu.memref_slice %arg10[%c2_i32] : memref<8x!tpu.dma_semaphore, #tpu.memory_space<semaphore_mem>> -> memref<1x!tpu.dma_semaphore, #tpu.memory_space<semaphore_mem>>
    %14 = tpu.memref_squeeze %13 : memref<1x!tpu.dma_semaphore, #tpu.memory_space<semaphore_mem>> -> memref<!tpu.dma_semaphore, #tpu.memory_space<semaphore_mem>>
    tpu.enqueue_dma source(%11 : memref<1x128xf32, #tpu.memory_space<any>>) target(%12 : memref<1x128xf32, #tpu.memory_space<vmem>>) target_semaphore(%14 : memref<!tpu.dma_semaphore, #tpu.memory_space<semaphore_mem>>)
    %c3 = arith.constant 3 : index
    %15 = memref.load %arg2[%c3] : memref<8xi32, #tpu.memory_space<smem>>
    %c3_i32 = arith.constant 3 : i32
    %c0_i32_9 = arith.constant 0 : i32
    %16 = tpu.memref_slice %arg4[%15, %c0_i32_9] : memref<512x128xf32, #tpu.memory_space<any>> -> memref<1x128xf32, #tpu.memory_space<any>>
    %c3_i32_10 = arith.constant 3 : i32
    %c0_i32_11 = arith.constant 0 : i32
    %17 = tpu.memref_slice %arg9[%c3_i32_10, %c0_i32_11] : memref<8x128xf32, #tpu.memory_space<vmem>> -> memref<1x128xf32, #tpu.memory_space<vmem>>
    %18 = tpu.memref_slice %arg10[%c3_i32] : memref<8x!tpu.dma_semaphore, #tpu.memory_space<semaphore_mem>> -> memref<1x!tpu.dma_semaphore, #tpu.memory_space<semaphore_mem>>
    %19 = tpu.memref_squeeze %18 : memref<1x!tpu.dma_semaphore, #tpu.memory_space<semaphore_mem>> -> memref<!tpu.dma_semaphore, #tpu.memory_space<semaphore_mem>>
    tpu.enqueue_dma source(%16 : memref<1x128xf32, #tpu.memory_space<any>>) target(%17 : memref<1x128xf32, #tpu.memory_space<vmem>>) target_semaphore(%19 : memref<!tpu.dma_semaphore, #tpu.memory_space<semaphore_mem>>)
    %c4 = arith.constant 4 : index
    %20 = memref.load %arg2[%c4] : memref<8xi32, #tpu.memory_space<smem>>
    %c4_i32 = arith.constant 4 : i32
    %c0_i32_12 = arith.constant 0 : i32
    %21 = tpu.memref_slice %arg4[%20, %c0_i32_12] : memref<512x128xf32, #tpu.memory_space<any>> -> memref<1x128xf32, #tpu.memory_space<any>>
    %c4_i32_13 = arith.constant 4 : i32
    %c0_i32_14 = arith.constant 0 : i32
    %22 = tpu.memref_slice %arg9[%c4_i32_13, %c0_i32_14] : memref<8x128xf32, #tpu.memory_space<vmem>> -> memref<1x128xf32, #tpu.memory_space<vmem>>
    %23 = tpu.memref_slice %arg10[%c4_i32] : memref<8x!tpu.dma_semaphore, #tpu.memory_space<semaphore_mem>> -> memref<1x!tpu.dma_semaphore, #tpu.memory_space<semaphore_mem>>
    %24 = tpu.memref_squeeze %23 : memref<1x!tpu.dma_semaphore, #tpu.memory_space<semaphore_mem>> -> memref<!tpu.dma_semaphore, #tpu.memory_space<semaphore_mem>>
    tpu.enqueue_dma source(%21 : memref<1x128xf32, #tpu.memory_space<any>>) target(%22 : memref<1x128xf32, #tpu.memory_space<vmem>>) target_semaphore(%24 : memref<!tpu.dma_semaphore, #tpu.memory_space<semaphore_mem>>)
    %c5 = arith.constant 5 : index
    %25 = memref.load %arg2[%c5] : memref<8xi32, #tpu.memory_space<smem>>
    %c5_i32 = arith.constant 5 : i32
    %c0_i32_15 = arith.constant 0 : i32
    %26 = tpu.memref_slice %arg4[%25, %c0_i32_15] : memref<512x128xf32, #tpu.memory_space<any>> -> memref<1x128xf32, #tpu.memory_space<any>>
    %c5_i32_16 = arith.constant 5 : i32
    %c0_i32_17 = arith.constant 0 : i32
    %27 = tpu.memref_slice %arg9[%c5_i32_16, %c0_i32_17] : memref<8x128xf32, #tpu.memory_space<vmem>> -> memref<1x128xf32, #tpu.memory_space<vmem>>
    %28 = tpu.memref_slice %arg10[%c5_i32] : memref<8x!tpu.dma_semaphore, #tpu.memory_space<semaphore_mem>> -> memref<1x!tpu.dma_semaphore, #tpu.memory_space<semaphore_mem>>
    %29 = tpu.memref_squeeze %28 : memref<1x!tpu.dma_semaphore, #tpu.memory_space<semaphore_mem>> -> memref<!tpu.dma_semaphore, #tpu.memory_space<semaphore_mem>>
    tpu.enqueue_dma source(%26 : memref<1x128xf32, #tpu.memory_space<any>>) target(%27 : memref<1x128xf32, #tpu.memory_space<vmem>>) target_semaphore(%29 : memref<!tpu.dma_semaphore, #tpu.memory_space<semaphore_mem>>)
    %c6 = arith.constant 6 : index
    %30 = memref.load %arg2[%c6] : memref<8xi32, #tpu.memory_space<smem>>
    %c6_i32 = arith.constant 6 : i32
    %c0_i32_18 = arith.constant 0 : i32
    %31 = tpu.memref_slice %arg4[%30, %c0_i32_18] : memref<512x128xf32, #tpu.memory_space<any>> -> memref<1x128xf32, #tpu.memory_space<any>>
    %c6_i32_19 = arith.constant 6 : i32
    %c0_i32_20 = arith.constant 0 : i32
    %32 = tpu.memref_slice %arg9[%c6_i32_19, %c0_i32_20] : memref<8x128xf32, #tpu.memory_space<vmem>> -> memref<1x128xf32, #tpu.memory_space<vmem>>
    %33 = tpu.memref_slice %arg10[%c6_i32] : memref<8x!tpu.dma_semaphore, #tpu.memory_space<semaphore_mem>> -> memref<1x!tpu.dma_semaphore, #tpu.memory_space<semaphore_mem>>
    %34 = tpu.memref_squeeze %33 : memref<1x!tpu.dma_semaphore, #tpu.memory_space<semaphore_mem>> -> memref<!tpu.dma_semaphore, #tpu.memory_space<semaphore_mem>>
    tpu.enqueue_dma source(%31 : memref<1x128xf32, #tpu.memory_space<any>>) target(%32 : memref<1x128xf32, #tpu.memory_space<vmem>>) target_semaphore(%34 : memref<!tpu.dma_semaphore, #tpu.memory_space<semaphore_mem>>)
    %c7 = arith.constant 7 : index
    %35 = memref.load %arg2[%c7] : memref<8xi32, #tpu.memory_space<smem>>
    %c7_i32 = arith.constant 7 : i32
    %c0_i32_21 = arith.constant 0 : i32
    %36 = tpu.memref_slice %arg4[%35, %c0_i32_21] : memref<512x128xf32, #tpu.memory_space<any>> -> memref<1x128xf32, #tpu.memory_space<any>>
    %c7_i32_22 = arith.constant 7 : i32
    %c0_i32_23 = arith.constant 0 : i32
    %37 = tpu.memref_slice %arg9[%c7_i32_22, %c0_i32_23] : memref<8x128xf32, #tpu.memory_space<vmem>> -> memref<1x128xf32, #tpu.memory_space<vmem>>
    %38 = tpu.memref_slice %arg10[%c7_i32] : memref<8x!tpu.dma_semaphore, #tpu.memory_space<semaphore_mem>> -> memref<1x!tpu.dma_semaphore, #tpu.memory_space<semaphore_mem>>
    %39 = tpu.memref_squeeze %38 : memref<1x!tpu.dma_semaphore, #tpu.memory_space<semaphore_mem>> -> memref<!tpu.dma_semaphore, #tpu.memory_space<semaphore_mem>>
    tpu.enqueue_dma source(%36 : memref<1x128xf32, #tpu.memory_space<any>>) target(%37 : memref<1x128xf32, #tpu.memory_space<vmem>>) target_semaphore(%39 : memref<!tpu.dma_semaphore, #tpu.memory_space<semaphore_mem>>)
    %c0_24 = arith.constant 0 : index
    %40 = memref.load %arg0[%c0_24] : memref<4xf32, #tpu.memory_space<smem>>
    %c1_25 = arith.constant 1 : index
    %41 = memref.load %arg0[%c1_25] : memref<4xf32, #tpu.memory_space<smem>>
    %c2_26 = arith.constant 2 : index
    %42 = memref.load %arg0[%c2_26] : memref<4xf32, #tpu.memory_space<smem>>
    %c3_27 = arith.constant 3 : index
    %43 = memref.load %arg0[%c3_27] : memref<4xf32, #tpu.memory_space<smem>>
    %c0_28 = arith.constant 0 : index
    %44 = memref.load %arg1[%c0_28] : memref<1xf32, #tpu.memory_space<smem>>
    %c0_29 = arith.constant 0 : index
    %c0_30 = arith.constant 0 : index
    %45 = vector.load %arg3[%c0_29, %c0_30] : memref<8x128xf32, #tpu.memory_space<vmem>>, vector<8x128xf32>
    %46 = arith.mulf %45, %45 : vector<8x128xf32>
    %cst = arith.constant dense<0.000000e+00> : vector<8xf32>
    %47 = vector.multi_reduction <add>, %46, %cst [1] : vector<8x128xf32> to vector<8xf32>
    %48 = vector.shape_cast %47 : vector<8xf32> to vector<8x1xf32>
    %cst_31 = arith.constant 1.000000e-24 : f32
    %49 = vector.broadcast %cst_31 : f32 to vector<8x1xf32>
    %50 = arith.maximumf %48, %49 : vector<8x1xf32>
    %51 = math.rsqrt %50 : vector<8x1xf32>
    %52 = vector.broadcast %51 : vector<8x1xf32> to vector<8x128xf32>
    %53 = arith.mulf %45, %52 : vector<8x128xf32>
    %54 = arith.truncf %53 : vector<8x128xf32> to vector<8x128xbf16>
    %c0_32 = arith.constant 0 : index
    %c0_33 = arith.constant 0 : index
    %55 = vector.load %arg5[%c0_32, %c0_33] : memref<8x128xbf16, #tpu.memory_space<vmem>>, vector<8x128xbf16>
    tpu.vector_store %arg5[%c0_32, %c0_33], %54 {strides = array<i32>} : memref<8x128xbf16, #tpu.memory_space<vmem>>, vector<8x128xbf16>,
    %c0_i32_34 = arith.constant 0 : i32
    %c0_i32_35 = arith.constant 0 : i32
    %c0_i32_36 = arith.constant 0 : i32
    %56 = tpu.memref_slice %arg4[%c0_i32_35, %c0_i32_36] : memref<512x128xf32, #tpu.memory_space<any>> -> memref<1x128xf32, #tpu.memory_space<any>>
    %c0_i32_37 = arith.constant 0 : i32
    %c0_i32_38 = arith.constant 0 : i32
    %57 = tpu.memref_slice %arg9[%c0_i32_37, %c0_i32_38] : memref<8x128xf32, #tpu.memory_space<vmem>> -> memref<1x128xf32, #tpu.memory_space<vmem>>
    %58 = tpu.memref_slice %arg10[%c0_i32_34] : memref<8x!tpu.dma_semaphore, #tpu.memory_space<semaphore_mem>> -> memref<1x!tpu.dma_semaphore, #tpu.memory_space<semaphore_mem>>
    %59 = tpu.memref_squeeze %58 : memref<1x!tpu.dma_semaphore, #tpu.memory_space<semaphore_mem>> -> memref<!tpu.dma_semaphore, #tpu.memory_space<semaphore_mem>>
    tpu.wait_dma2 semaphore(%59 : memref<!tpu.dma_semaphore, #tpu.memory_space<semaphore_mem>>) src(%56 : memref<1x128xf32, #tpu.memory_space<any>>) dst(%57 : memref<1x128xf32, #tpu.memory_space<vmem>>)
    %c1_i32_39 = arith.constant 1 : i32
    %c0_i32_40 = arith.constant 0 : i32
    %c0_i32_41 = arith.constant 0 : i32
    %60 = tpu.memref_slice %arg4[%c0_i32_40, %c0_i32_41] : memref<512x128xf32, #tpu.memory_space<any>> -> memref<1x128xf32, #tpu.memory_space<any>>
    %c1_i32_42 = arith.constant 1 : i32
    %c0_i32_43 = arith.constant 0 : i32
    %61 = tpu.memref_slice %arg9[%c1_i32_42, %c0_i32_43] : memref<8x128xf32, #tpu.memory_space<vmem>> -> memref<1x128xf32, #tpu.memory_space<vmem>>
    %62 = tpu.memref_slice %arg10[%c1_i32_39] : memref<8x!tpu.dma_semaphore, #tpu.memory_space<semaphore_mem>> -> memref<1x!tpu.dma_semaphore, #tpu.memory_space<semaphore_mem>>
    %63 = tpu.memref_squeeze %62 : memref<1x!tpu.dma_semaphore, #tpu.memory_space<semaphore_mem>> -> memref<!tpu.dma_semaphore, #tpu.memory_space<semaphore_mem>>
    tpu.wait_dma2 semaphore(%63 : memref<!tpu.dma_semaphore, #tpu.memory_space<semaphore_mem>>) src(%60 : memref<1x128xf32, #tpu.memory_space<any>>) dst(%61 : memref<1x128xf32, #tpu.memory_space<vmem>>)
    %c2_i32_44 = arith.constant 2 : i32
    %c0_i32_45 = arith.constant 0 : i32
    %c0_i32_46 = arith.constant 0 : i32
    %64 = tpu.memref_slice %arg4[%c0_i32_45, %c0_i32_46] : memref<512x128xf32, #tpu.memory_space<any>> -> memref<1x128xf32, #tpu.memory_space<any>>
    %c2_i32_47 = arith.constant 2 : i32
    %c0_i32_48 = arith.constant 0 : i32
    %65 = tpu.memref_slice %arg9[%c2_i32_47, %c0_i32_48] : memref<8x128xf32, #tpu.memory_space<vmem>> -> memref<1x128xf32, #tpu.memory_space<vmem>>
    %66 = tpu.memref_slice %arg10[%c2_i32_44] : memref<8x!tpu.dma_semaphore, #tpu.memory_space<semaphore_mem>> -> memref<1x!tpu.dma_semaphore, #tpu.memory_space<semaphore_mem>>
    %67 = tpu.memref_squeeze %66 : memref<1x!tpu.dma_semaphore, #tpu.memory_space<semaphore_mem>> -> memref<!tpu.dma_semaphore, #tpu.memory_space<semaphore_mem>>
    tpu.wait_dma2 semaphore(%67 : memref<!tpu.dma_semaphore, #tpu.memory_space<semaphore_mem>>) src(%64 : memref<1x128xf32, #tpu.memory_space<any>>) dst(%65 : memref<1x128xf32, #tpu.memory_space<vmem>>)
    %c3_i32_49 = arith.constant 3 : i32
    %c0_i32_50 = arith.constant 0 : i32
    %c0_i32_51 = arith.constant 0 : i32
    %68 = tpu.memref_slice %arg4[%c0_i32_50, %c0_i32_51] : memref<512x128xf32, #tpu.memory_space<any>> -> memref<1x128xf32, #tpu.memory_space<any>>
    %c3_i32_52 = arith.constant 3 : i32
    %c0_i32_53 = arith.constant 0 : i32
    %69 = tpu.memref_slice %arg9[%c3_i32_52, %c0_i32_53] : memref<8x128xf32, #tpu.memory_space<vmem>> -> memref<1x128xf32, #tpu.memory_space<vmem>>
    %70 = tpu.memref_slice %arg10[%c3_i32_49] : memref<8x!tpu.dma_semaphore, #tpu.memory_space<semaphore_mem>> -> memref<1x!tpu.dma_semaphore, #tpu.memory_space<semaphore_mem>>
    %71 = tpu.memref_squeeze %70 : memref<1x!tpu.dma_semaphore, #tpu.memory_space<semaphore_mem>> -> memref<!tpu.dma_semaphore, #tpu.memory_space<semaphore_mem>>
    tpu.wait_dma2 semaphore(%71 : memref<!tpu.dma_semaphore, #tpu.memory_space<semaphore_mem>>) src(%68 : memref<1x128xf32, #tpu.memory_space<any>>) dst(%69 : memref<1x128xf32, #tpu.memory_space<vmem>>)
    %c4_i32_54 = arith.constant 4 : i32
    %c0_i32_55 = arith.constant 0 : i32
    %c0_i32_56 = arith.constant 0 : i32
    %72 = tpu.memref_slice %arg4[%c0_i32_55, %c0_i32_56] : memref<512x128xf32, #tpu.memory_space<any>> -> memref<1x128xf32, #tpu.memory_space<any>>
    %c4_i32_57 = arith.constant 4 : i32
    %c0_i32_58 = arith.constant 0 : i32
    %73 = tpu.memref_slice %arg9[%c4_i32_57, %c0_i32_58] : memref<8x128xf32, #tpu.memory_space<vmem>> -> memref<1x128xf32, #tpu.memory_space<vmem>>
    %74 = tpu.memref_slice %arg10[%c4_i32_54] : memref<8x!tpu.dma_semaphore, #tpu.memory_space<semaphore_mem>> -> memref<1x!tpu.dma_semaphore, #tpu.memory_space<semaphore_mem>>
    %75 = tpu.memref_squeeze %74 : memref<1x!tpu.dma_semaphore, #tpu.memory_space<semaphore_mem>> -> memref<!tpu.dma_semaphore, #tpu.memory_space<semaphore_mem>>
    tpu.wait_dma2 semaphore(%75 : memref<!tpu.dma_semaphore, #tpu.memory_space<semaphore_mem>>) src(%72 : memref<1x128xf32, #tpu.memory_space<any>>) dst(%73 : memref<1x128xf32, #tpu.memory_space<vmem>>)
    %c5_i32_59 = arith.constant 5 : i32
    %c0_i32_60 = arith.constant 0 : i32
    %c0_i32_61 = arith.constant 0 : i32
    %76 = tpu.memref_slice %arg4[%c0_i32_60, %c0_i32_61] : memref<512x128xf32, #tpu.memory_space<any>> -> memref<1x128xf32, #tpu.memory_space<any>>
    %c5_i32_62 = arith.constant 5 : i32
    %c0_i32_63 = arith.constant 0 : i32
    %77 = tpu.memref_slice %arg9[%c5_i32_62, %c0_i32_63] : memref<8x128xf32, #tpu.memory_space<vmem>> -> memref<1x128xf32, #tpu.memory_space<vmem>>
    %78 = tpu.memref_slice %arg10[%c5_i32_59] : memref<8x!tpu.dma_semaphore, #tpu.memory_space<semaphore_mem>> -> memref<1x!tpu.dma_semaphore, #tpu.memory_space<semaphore_mem>>
    %79 = tpu.memref_squeeze %78 : memref<1x!tpu.dma_semaphore, #tpu.memory_space<semaphore_mem>> -> memref<!tpu.dma_semaphore, #tpu.memory_space<semaphore_mem>>
    tpu.wait_dma2 semaphore(%79 : memref<!tpu.dma_semaphore, #tpu.memory_space<semaphore_mem>>) src(%76 : memref<1x128xf32, #tpu.memory_space<any>>) dst(%77 : memref<1x128xf32, #tpu.memory_space<vmem>>)
    %c6_i32_64 = arith.constant 6 : i32
    %c0_i32_65 = arith.constant 0 : i32
    %c0_i32_66 = arith.constant 0 : i32
    %80 = tpu.memref_slice %arg4[%c0_i32_65, %c0_i32_66] : memref<512x128xf32, #tpu.memory_space<any>> -> memref<1x128xf32, #tpu.memory_space<any>>
    %c6_i32_67 = arith.constant 6 : i32
    %c0_i32_68 = arith.constant 0 : i32
    %81 = tpu.memref_slice %arg9[%c6_i32_67, %c0_i32_68] : memref<8x128xf32, #tpu.memory_space<vmem>> -> memref<1x128xf32, #tpu.memory_space<vmem>>
    %82 = tpu.memref_slice %arg10[%c6_i32_64] : memref<8x!tpu.dma_semaphore, #tpu.memory_space<semaphore_mem>> -> memref<1x!tpu.dma_semaphore, #tpu.memory_space<semaphore_mem>>
    %83 = tpu.memref_squeeze %82 : memref<1x!tpu.dma_semaphore, #tpu.memory_space<semaphore_mem>> -> memref<!tpu.dma_semaphore, #tpu.memory_space<semaphore_mem>>
    tpu.wait_dma2 semaphore(%83 : memref<!tpu.dma_semaphore, #tpu.memory_space<semaphore_mem>>) src(%80 : memref<1x128xf32, #tpu.memory_space<any>>) dst(%81 : memref<1x128xf32, #tpu.memory_space<vmem>>)
    %c7_i32_69 = arith.constant 7 : i32
    %c0_i32_70 = arith.constant 0 : i32
    %c0_i32_71 = arith.constant 0 : i32
    %84 = tpu.memref_slice %arg4[%c0_i32_70, %c0_i32_71] : memref<512x128xf32, #tpu.memory_space<any>> -> memref<1x128xf32, #tpu.memory_space<any>>
    %c7_i32_72 = arith.constant 7 : i32
    %c0_i32_73 = arith.constant 0 : i32
    %85 = tpu.memref_slice %arg9[%c7_i32_72, %c0_i32_73] : memref<8x128xf32, #tpu.memory_space<vmem>> -> memref<1x128xf32, #tpu.memory_space<vmem>>
    %86 = tpu.memref_slice %arg10[%c7_i32_69] : memref<8x!tpu.dma_semaphore, #tpu.memory_space<semaphore_mem>> -> memref<1x!tpu.dma_semaphore, #tpu.memory_space<semaphore_mem>>
    %87 = tpu.memref_squeeze %86 : memref<1x!tpu.dma_semaphore, #tpu.memory_space<semaphore_mem>> -> memref<!tpu.dma_semaphore, #tpu.memory_space<semaphore_mem>>
    tpu.wait_dma2 semaphore(%87 : memref<!tpu.dma_semaphore, #tpu.memory_space<semaphore_mem>>) src(%84 : memref<1x128xf32, #tpu.memory_space<any>>) dst(%85 : memref<1x128xf32, #tpu.memory_space<vmem>>)
    %c0_74 = arith.constant 0 : index
    %c0_75 = arith.constant 0 : index
    %88 = vector.load %arg9[%c0_74, %c0_75] : memref<8x128xf32, #tpu.memory_space<vmem>>, vector<8x128xf32>
    %89 = arith.mulf %53, %88 : vector<8x128xf32>
    %cst_76 = arith.constant dense<0.000000e+00> : vector<8xf32>
    %90 = vector.multi_reduction <add>, %89, %cst_76 [1] : vector<8x128xf32> to vector<8xf32>
    %91 = vector.shape_cast %90 : vector<8xf32> to vector<8x1xf32>
    %cst_77 = arith.constant -1.000000e+00 : f32
    %cst_78 = arith.constant 1.000000e+00 : f32
    %92 = vector.broadcast %cst_77 : f32 to vector<8x1xf32>
    %93 = arith.maximumf %92, %91 : vector<8x1xf32>
    %94 = vector.broadcast %cst_78 : f32 to vector<8x1xf32>
    %95 = arith.minimumf %94, %93 : vector<8x1xf32>
    %96 = arith.mulf %95, %95 : vector<8x1xf32>
    %cst_79 = arith.constant 1.000000e+00 : f32
    %97 = vector.broadcast %cst_79 : f32 to vector<8x1xf32>
    %98 = arith.subf %97, %96 : vector<8x1xf32>
    %cst_80 = arith.constant 0.000000e+00 : f32
    %99 = vector.broadcast %cst_80 : f32 to vector<8x1xf32>
    %100 = arith.maximumf %98, %99 : vector<8x1xf32>
    %101 = math.sqrt %100 : vector<8x1xf32>
    %102 = vector.broadcast %40 : f32 to vector<8x1xf32>
    %103 = arith.mulf %95, %102 : vector<8x1xf32>
    %104 = vector.broadcast %41 : f32 to vector<8x1xf32>
    %105 = arith.mulf %101, %104 : vector<8x1xf32>
    %106 = arith.subf %103, %105 : vector<8x1xf32>
    %107 = vector.broadcast %42 : f32 to vector<8x1xf32>
    %108 = arith.cmpf ogt, %95, %107 : vector<8x1xf32>
    %109 = vector.broadcast %43 : f32 to vector<8x1xf32>
    %110 = arith.subf %95, %109 : vector<8x1xf32>
    %111 = arith.select %108, %106, %110 : vector<8x1xi1>, vector<8x1xf32>
    %112 = vector.shape_cast %95 : vector<8x1xf32> to vector<1x8x1xf32>
    %cst_81 = arith.constant dense<0.000000e+00> : vector<1xf32>
    %113 = vector.multi_reduction <add>, %112, %cst_81 [1, 2] : vector<1x8x1xf32> to vector<1xf32>
    %114 = vector.shape_cast %113 : vector<1xf32> to vector<1x1x1xf32>
    %115 = vector.extract %114[0, 0, 0] : f32 from vector<1x1x1xf32>
    %cst_82 = arith.constant 8.000000e+00 : f32
    %116 = arith.divf %115, %cst_82 : f32
    %cst_83 = arith.constant 0.00999999977 : f32
    %117 = arith.mulf %116, %cst_83 : f32
    %cst_84 = arith.constant 9.900000e-01 : f32
    %118 = arith.mulf %cst_84, %44 : f32
    %119 = arith.addf %117, %118 : f32
    %c0_85 = arith.constant 0 : index
    %c0_86 = arith.constant 0 : index
    %120 = vector.load %arg6[%c0_85, %c0_86] : memref<8x1xf32, #tpu.memory_space<vmem>>, vector<8x1xf32>
    tpu.vector_store %arg6[%c0_85, %c0_86], %106 {strides = array<i32>} : memref<8x1xf32, #tpu.memory_space<vmem>>, vector<8x1xf32>,
    %c0_87 = arith.constant 0 : index
    %c0_88 = arith.constant 0 : index
    %121 = vector.load %arg7[%c0_87, %c0_88] : memref<8x1xf32, #tpu.memory_space<vmem>>, vector<8x1xf32>
    tpu.vector_store %arg7[%c0_87, %c0_88], %111 {strides = array<i32>} : memref<8x1xf32, #tpu.memory_space<vmem>>, vector<8x1xf32>,
    %122 = vector.broadcast %119 : f32 to vector<1x1xf32>
    %c0_89 = arith.constant 0 : index
    %c0_90 = arith.constant 0 : index
    %123 = vector.load %arg8[%c0_89, %c0_90] : memref<1x1xf32, #tpu.memory_space<vmem>>, vector<1x1xf32>
    tpu.vector_store %arg8[%c0_89, %c0_90], %122 {strides = array<i32>} : memref<1x1xf32, #tpu.memory_space<vmem>>, vector<1x1xf32>,
    return
  }
}

</mosaic_0001>

<bundles_post_ra>
// kernel: _arcface_forward.3
= control target key start
LH: loop header
LB: loop body
LE: loop exit
PB: predicated region body
PF: predicated region fallthrough
CT: control target
= control target key end

     0   :  { %s907_s0 = inlined_call_operand.vmem [shape: s32[8,1], index: 0, kind: input, shape index: {}]   ;;  %s908_s1 = inlined_call_operand.vmem [shape: bf16[8,128], index: 1, kind: input, shape index: {}]   ;;  %s909_s2 = inlined_call_operand.vmem [shape: bf16[128,512], index: 2, kind: input, shape index: {}]   ;;  %s910_s3 = inlined_call_operand.vmem [shape: f32[8,1], index: 3, kind: input, shape index: {}]   ;;  %s911_s4 = inlined_call_operand.vmem [shape: f32[8,1], index: 4, kind: input, shape index: {}]   ;;  %s912_s5 = inlined_call_operand.<no memory space> [shape: f32[1,1], index: 5, kind: input, shape index: {}]   ;;  %s913_s6 = inlined_call_operand.hbm [shape: f32[8,512], index: 6, kind: output, shape index: {}]  }
   0x1   :  { %v11_v0 = vstv %s912_s5 }
   0x2   :  { %12 = vst [vmem:[#allocation2] sm:$0x1] %v11_v0 }
   0x3   :  { %13 = vsyncpa [#allocation5], 0 }
   0x4   :  { %15 = vsyncpa [#allocation5 + $0x1], 0  ;;  %s783_s23 = smov 0   ;;  %s785_s24 = smov 0  }
   0x5   :  { %s787_s25 = smov 0   ;;  %s789_s26 = smov 0  }
   0x6 LB: > { %s573_s5 = sadd.s32 4294967295, %s739_s26   ;;  %s574_s27 = sadd.s32 4294967294, %s739_s26   ;;  %s739_s26 = sphi %s789_s26, %s919_s26   ;;  %s735_s25 = sphi %s787_s25, %s918_s25   ;;  %s731_s24 = sphi %s785_s24, %s917_s24   ;;  %s727_s23 = sphi %s783_s23, %s916_s23  }
   0x7   : > { %s806_s28 = sadd.s32 1, %s739_s26   ;;  %s70_s29 = sadd.s32 1, %s735_s25 }
   0x8   : > { %s67_s30 = ssub.s32 %s739_s26, %s806_s28  ;;  %p77_p0 = scmp.ne.s32.totalorder %s735_s25, %s731_s24 }
   0x9   : > { %p68_p1 = scmp.eq.s32.totalorder %s67_s30, 0  ;;  %p78_p2 = scmp.eq.s32.totalorder %s739_s26, 0 }
   0xa   : > { %p170_p3 = scmp.eq.s32.totalorder %s573_s5, 3  ;;  %p175_p4 = scmp.ne.s32.totalorder %s731_s24, %s727_s23 }
   0xb   : > { %s819_s7 = scalar_select %p68_p1, %s735_s25, %s70_s29  }
   0xc   : > { %p79_p5 = por %p78_p2, %p77_p0  ;;  %p821_p6 = por %p170_p3, %p77_p0 }
   0xd   : > { %p176_p7 = scmp.eq.s32.totalorder %s574_s27, 3  ;;  %p576_p9 = scmp.ge.s32.totalorder %s739_s26, 4 }
   0xf   : > { %p825_p8 = por %p176_p7, %p175_p4  ;;  %207 = sbr.rel (%p576_p9) target bundleno = 35 (0x23), region = 36 }
  0x14   : > { %210 = sbr.rel (!%p79_p5) target bundleno = 35 (0x23), region = 40  ;;  %s212_s10 = sand.u32 (%p79_p5), 1, %s735_s25  }
  0x15   : > { %s578_s11 = sshll.u32 (%p79_p5), %s739_s26, 2  ;;  %s577_s12 = sshll.u32 (%p79_p5), %s212_s10, 6 }
  0x16   : > { %s835_s15 = scalar_lea.vmem (%p79_p5), %s909_s2, %s578_s11  ;;  %s214_s16 = scalar_lea.vmem (%p79_p5), [#allocation3], %s577_s12 }
  0x17   : > { %v233_v1 = vld [vmem:[%s835_s15] sm:$0xf] (%p79_p5)  ;;  %v235_v2 = vld [vmem:[%s835_s15 + $0x10] sm:$0xf] (%p79_p5) }
  0x18   : > { %234 = vst [vmem:[%s214_s16] sm:$0xf] (%p79_p5), %v233_v1  ;;  %236 = vst [vmem:[%s214_s16 + $0x4] sm:$0xf] (%p79_p5), %v235_v2  ;;  %v237_v3 = vld [vmem:[%s835_s15 + $0x20] sm:$0xf] (%p79_p5) }
  0x19   : > { %v239_v4 = vld [vmem:[%s835_s15 + $0x30] sm:$0xf]  ;;  %v241_v5 = vld [vmem:[%s835_s15 + $0x40] sm:$0xf]  ;;  %238 = vst [vmem:[%s214_s16 + $0x8] sm:$0xf] %v237_v3 }
  0x1a   : > { %240 = vst [vmem:[%s214_s16 + $0xc] sm:$0xf] %v239_v4  ;;  %242 = vst [vmem:[%s214_s16 + $0x10] sm:$0xf] %v241_v5  ;;  %v243_v6 = vld [vmem:[%s835_s15 + $0x50] sm:$0xf] }
  0x1b   : > { %v245_v7 = vld [vmem:[%s835_s15 + $0x60] sm:$0xf]  ;;  %v247_v8 = vld [vmem:[%s835_s15 + $0x70] sm:$0xf]  ;;  %244 = vst [vmem:[%s214_s16 + $0x14] sm:$0xf] %v243_v6 }
  0x1c   : > { %246 = vst [vmem:[%s214_s16 + $0x18] sm:$0xf] %v245_v7  ;;  %248 = vst [vmem:[%s214_s16 + $0x1c] sm:$0xf] %v247_v8  ;;  %v249_v9 = vld [vmem:[%s835_s15 + $0x80] sm:$0xf] }
  0x1d   : > { %v251_v10 = vld [vmem:[%s835_s15 + $0x90] sm:$0xf]  ;;  %v253_v11 = vld [vmem:[%s835_s15 + $0xa0] sm:$0xf]  ;;  %250 = vst [vmem:[%s214_s16 + $0x20] sm:$0xf] %v249_v9 }
  0x1e   : > { %252 = vst [vmem:[%s214_s16 + $0x24] sm:$0xf] %v251_v10  ;;  %254 = vst [vmem:[%s214_s16 + $0x28] sm:$0xf] %v253_v11  ;;  %v255_v12 = vld [vmem:[%s835_s15 + $0xb0] sm:$0xf] }
  0x1f   : > { %v257_v13 = vld [vmem:[%s835_s15 + $0xc0] sm:$0xf]  ;;  %v259_v14 = vld [vmem:[%s835_s15 + $0xd0] sm:$0xf]  ;;  %256 = vst [vmem:[%s214_s16 + $0x2c] sm:$0xf] %v255_v12 }
  0x20   : > { %258 = vst [vmem:[%s214_s16 + $0x30] sm:$0xf] %v257_v13  ;;  %260 = vst [vmem:[%s214_s16 + $0x34] sm:$0xf] %v259_v14  ;;  %v261_v15 = vld [vmem:[%s835_s15 + $0xe0] sm:$0xf] }
  0x21   : > { %v263_v16 = vld [vmem:[%s835_s15 + $0xf0] sm:$0xf]  ;;  %262 = vst [vmem:[%s214_s16 + $0x38] sm:$0xf] %v261_v15 }
  0x22   : > { %264 = vst [vmem:[%s214_s16 + $0x3c] sm:$0xf] %v263_v16 }
  0x23 PF: > { %p579_p10 = scmp.ge.s32.totalorder %s739_s26, 1  ;;  %p319_p11 = scmp.lt.s32.totalorder %s739_s26, 5 }
  0x25   : > { %p320_p12 = pnand %p579_p10, %p319_p11 }
  0x26   : > { %s856_s17 = sand.u32 (!%p320_p12), 1, %s731_s24   ;;  %s591_s13 = sshll.u32 (!%p320_p12), %s573_s5, 7 }
  0x27   : > { %323 = sbr.rel (%p320_p12) target bundleno = 295 (0x127), region = 81  ;;  %s580_s18 = sshll.u32 (!%p320_p12), %s856_s17, 6 }
  0x28   : > { %s328_s27 = scalar_lea.vmem (!%p320_p12), [#allocation3], %s580_s18  ;;  %s581_s14 = sshll.u32 (!%p320_p12), %s856_s17, 3 }
  0x29   : > { %s354_s15 = scalar_lea.vmem (!%p320_p12), [#allocation4], %s581_s14  ;;  %s507_s19 = scalar_lea.hbm (!%p320_p12), %s913_s6, %s591_s13 }
  0x2a   : > { %s509_s5 = sshll.u32 (!%p320_p12), %s354_s15, 4  ;;  %s496_s20 = scalar_lea.sflag (!%p320_p12), [#allocation5], %s856_s17  ;;  %s510_s5 = int_to_ptr.vmem [resolvable:$true] %s509_s5 }
  0x2b   : > { %s679_s21 = scalar_lea.vmem (!%p320_p12), %s510_s5, 128  ;;  %s744_s22 = smov (!%p320_p12), [#allocation4]  }
  0x2c   : > { %v741_v17 = vmov 0.0   ;;  %vm742_vm0 = vmmov 0   ;;  %v475_v18 = vld [vmem:[%s910_s3] sm:$0xff]  ;;  %v743_v20 = vmov 0   ;;  %v672_v24 = vld [vmem:[%s328_s27 + $0x30] sm:$0xff]   ;;  %v673_v25 = vld [vmem:[%s328_s27 + $0x28] sm:$0xff]   ;;  %v463_v32 = vlaneseq  ;;  %p680_p13 = scmp.ne.s32.totalorder %s510_s5, %s679_s21 }
  0x2d   : > { %605 = vmatprep.subr.bf16.mxu0 %v741_v17  ;;  %621 = vmatprep.mubr.msk.bf16.mxu0 %vm742_vm0, %v741_v17  ;;  %v486_v19 = vld [vmem:[%s911_s4] sm:$0xff]  ;;  %v676_v28 = vld [vmem:[%s328_s27 + $0x10] sm:$0xff]   ;;  %v677_v29 = vld [vmem:[%s328_s27 + $0x8] sm:$0xff]   ;;  %v466_v37 = vstv %s591_s13 }
  0x2e   : > { %669 = vset.pattern.permute.xlu0 %v743_v20  ;;  %670 = vset.pattern.permute.xlu1 %v743_v20  ;;  %v473_v21 = vld [vmem:[#allocation2] sm:$0x1]  ;;  %v674_v26 = vld [vmem:[%s328_s27 + $0x20] sm:$0xff]   ;;  %v464_v34 = vand.u32 127, %v463_v32  ;;  %p681_p0 = pnand %p680_p13, %p821_p6 }
  0x2f   : > { %v671_v22 = vld [vmem:[%s328_s27 + $0x38] sm:$0xff]   ;;  %478 = vperm.xlu0 %669, %v475_v18   ;;  %489 = vperm.xlu1 %670, %v486_v19   ;;  %625 = vpush %v473_v21  ;;  %v678_v30 = vld [vmem:[%s328_s27] sm:$0xff]  }
  0x30   : > { %v468_v23 = vld [vmem:[%s907_s0] sm:$0xff]  ;;  %606 = vmatpush3.bf16.msra.mxu0 %v671_v22  ;;  %v467_v41 = vadd.s32 %v466_v37, %v464_v34  ;;  %p682_p1 = pneg %p681_p0 }
  0x31   : > { %607 = vmatprep.subr.bf16.mxu0 %v741_v17  ;;  %v675_v27 = vld [vmem:[%s328_s27 + $0x18] sm:$0xff]   ;;  %s683_s27 = sshll.u32 %s744_s22, 4  ;;  %s684_s27 = int_to_ptr.vmem [resolvable:$false] %s683_s27 }
  0x32   : > { %v356_v31 = vld [vmem:[%s908_s1] sm:$0xf]  ;;  %s685_s29 = scalar_lea.vmem %s684_s27, 256  ;;  %p686_p2 = scmp.lt.s32.totalorder %s510_s5, %s684_s27 }
  0x33   : > { %470 = vperm.xlu0 %669, %v468_v23   ;;  %p687_p3 = scmp.lt.s32.totalorder %s685_s29, %s679_s21 }
  0x34   : > { %608 = vmatpush3.bf16.msra.mxu0 %v672_v24 }
  0x35   : > { %609 = vmatprep.subr.bf16.mxu0 %v741_v17  ;;  %p688_p4 = por %p687_p3, %p686_p2 }
  0x37   : > { %p689_p5 = pnand %p688_p4, %p682_p1 }
  0x38   : > { %610 = vmatpush3.bf16.msra.mxu0 %v673_v25 }
  0x39   : > { %611 = vmatprep.subr.bf16.mxu0 %v741_v17 }
  0x3c   : > { %612 = vmatpush3.bf16.msra.mxu0 %v674_v26 }
  0x3d   : > { %613 = vmatprep.subr.bf16.mxu0 %v741_v17 }
  0x40   : > { %614 = vmatpush3.bf16.msra.mxu0 %v675_v27 }
  0x41   : > { %615 = vmatprep.subr.bf16.mxu0 %v741_v17 }
  0x44   : > { %616 = vmatpush3.bf16.msra.mxu0 %v676_v28 }
  0x45   : > { %617 = vmatprep.subr.bf16.mxu0 %v741_v17 }
  0x48   : > { %618 = vmatpush3.bf16.msra.mxu0 %v677_v29 }
  0x49   : > { %619 = vmatprep.subr.bf16.mxu0 %v741_v17 }
  0x4c   : > { %620 = vmatpush3.bf16.msra.mxu0 %v678_v30 }
  0x4f   : > { %622 = vmatmul.mubr.bf16.vlgmr.msra.gmra.mxu0 %v356_v31 }
  0x60   : > { %s626_s12 = spop %625 }
  0x61   : > { %v482_v36 = vstv %s626_s12 }
  0xaa   : > { %v479_v33 = vpop.permute.xlu0 %478  ;;  %v490_v45 = vpop.permute.xlu1 %489 }
  0xae   : > { %v471_v42 = vpop.permute.xlu0 %470 }
  0xaf   : > { %vm472_vm2 = vcmp.eq.s32.totalorder %v467_v41, %v471_v42 }
 0x10f   : > { %v455_v35 = vpop.f32.mrf.mxu0 }
 0x110   : > { %v590_v38 = vclamps-f32 %v455_v35, 1.0 }
 0x111   : > { %v623_v39 = vpop.f32.mrf.mxu0 }
 0x112   : > { %v483_v40 = vadd.f32 %v590_v38, %v482_v36  ;;  %vm481_vm1 = vcmp.gt.f32.partialorder %v590_v38, %v479_v33 }
 0x113   : > { %v458_v43 = vpop.f32.mrf.mxu0 }
 0x114   : > { %v484_v44 = vmul.f32 %v590_v38, %v483_v40 }
 0x115   : > { %v624_v46 = vpop.f32.mrf.mxu0 }
 0x116   : > { %v485_v47 = vsel %vm481_vm1, %v484_v44, %v590_v38 }
 0x117   : > { %v492_v48 = vsel %vm472_vm2, %v490_v45, %v485_v47 }
 0x118   : > { %v493_v49 = vmul.f32 35.0, %v492_v48 }
 0x11a   : > { %494 = vst [vmem:[%s354_s15] sm:$0xff] %v493_v49 }
 0x11b   : > { %692 = shalt.err (!%p689_p5)
}
 0x11c   : > { %s693_s30 = scalar_lea.hbm %s507_s19, 128  ;;  %s697_s11 = scalar_lea.hbm %s913_s6, 512 }
 0x11d   : > { %p694_p7 = scmp.ne.s32.totalorder %s507_s19, %s693_s30  ;;  %p698_p11 = scmp.lt.s32.totalorder %s507_s19, %s913_s6 }
 0x11e   : > { %p699_p12 = scmp.lt.s32.totalorder %s697_s11, %s693_s30 }
 0x11f   : > { %p695_p9 = pnand %p694_p7, %p821_p6 }
 0x120   : > { %p700_p13 = por %p699_p12, %p698_p11 }
 0x121   : > { %p696_p10 = pneg %p695_p9 }
 0x123   : > { %p701_p0 = pnand %p700_p13, %p696_p10 }
 0x125   : > { %704 = shalt.err (!%p701_p0)
}
 0x126   : > { %627 = dma.vmem_to_hbm [thread:$0]  (%p821_p6), %s510_s5, 128, %s507_s19, %s496_s20  }
 0x127 PF: > { %p633_p1 = scmp.ge.s32.totalorder %s739_s26, 2  ;;  %s521_s14 = sand.u32 1, %s727_s23  }
 0x128   : > { %s522_s15 = scalar_lea.sflag [#allocation5], %s521_s14 }
 0x129   : > { %p630_p2 = pnand %p633_p1, %p825_p8 }
 0x12b   : > { %p631_p3 = pneg %p630_p2 }
 0x12d   : > { %722 = dma.done.wait (%p631_p3), %s522_s15, 128  }
 0x12e   : > { %724 = vsyncadd (%p631_p3), %s522_s15, 4294967168  ;;  %p18_p4 = scmp.ge.s32.totalorder %s806_s28, 6   ;;  %s916_s23 = smov %s731_s24 }
 0x12f   : > { %s917_s24 = smov %s735_s25  ;;  %s918_s25 = smov %s819_s7 }
 0x130   : > { %s919_s26 = smov %s806_s28  ;;  %20 = sbr.rel (!%p18_p4) target bundleno = 6 (0x6), region = 125 }
 0x135   :  { %527 = vsyncpa [#allocation5], 1 }
 0x136   :  { %529 = vsyncpa [#allocation5 + $0x1], 1 }

// kernel: _arcface_forward.2
= control target key start
LH: loop header
LB: loop body
LE: loop exit
PB: predicated region body
PF: predicated region fallthrough
CT: control target
= control target key end

     0   :  { %15 = vsyncpa [#allocation7], 0  ;;  %s858_s0 = inlined_call_operand.vmem [shape: f32[4], index: 0, kind: input, shape index: {}]   ;;  %s859_s1 = inlined_call_operand.<no memory space> [shape: f32[1], index: 1, kind: input, shape index: {}]   ;;  %s860_s2 = inlined_call_operand.vmem [shape: s32[8], index: 2, kind: input, shape index: {}]   ;;  %s861_s3 = inlined_call_operand.vmem [shape: f32[8,128], index: 3, kind: input, shape index: {}]   ;;  %s862_s4 = inlined_call_operand.hbm [shape: f32[512,128], index: 4, kind: input, shape index: {}]   ;;  %s863_s5 = inlined_call_operand.vmem [shape: bf16[8,128], index: 5, kind: output, shape index: {0}]   ;;  %s864_s6 = inlined_call_operand.vmem [shape: f32[8,1], index: 6, kind: output, shape index: {1}]   ;;  %s865_s7 = inlined_call_operand.vmem [shape: f32[8,1], index: 7, kind: output, shape index: {2}]   ;;  %s866_s8 = inlined_call_operand.hbm [shape: f32[1,1], index: 8, kind: output, shape index: {3}]  }
   0x1   :  { %16 = vsyncpa [#allocation9], 0 }
   0x2   :  { %17 = vsyncpa [#allocation6], 0  ;;  %s24_s29 = sshll.u32 %s858_s0, 4  ;;  %s36_s10 = sshll.u32 %s860_s2, 4  ;;  %s25_s29 = int_to_ptr.vmem [resolvable:$true] %s24_s29  ;;  %s37_s10 = int_to_ptr.vmem [resolvable:$true] %s36_s10 }
   0x3   :  { %s397_s11 = scalar_lea.vmem %s25_s29, 16  ;;  %p402_p1 = scmp.lt.s32.totalorder %s25_s29, %s25_s29 }
   0x4   :  { %p398_p0 = scmp.ne.s32.totalorder %s25_s29, %s397_s11  ;;  %p403_p2 = scmp.lt.s32.totalorder %s397_s11, %s397_s11 }
   0x6   :  { %p404_p3 = por %p403_p2, %p402_p1 }
   0x8   :  { %p405_p4 = pnand %p404_p3, %p398_p0 }
   0xa   :  { %408 = shalt.err (!%p405_p4)
}
   0xb   :  { %s639_s12 = smov [#allocation5]   ;;  %s409_s13 = scalar_lea.vmem %s37_s10, 16 }
   0xc   :  { %27 = dma.vmem_to_smem %s25_s29, 16, %s639_s12, [#allocation7]  }
   0xd   :  { %p410_p5 = scmp.ne.s32.totalorder %s37_s10, %s409_s13  ;;  %p414_p6 = scmp.lt.s32.totalorder %s37_s10, %s37_s10 }
   0xe   :  { %p415_p7 = scmp.lt.s32.totalorder %s409_s13, %s409_s13 }
  0x10   :  { %p416_p8 = por %p415_p7, %p414_p6 }
  0x12   :  { %p417_p9 = pnand %p416_p8, %p410_p5 }
  0x14   :  { %420 = shalt.err (!%p417_p9)
}
  0x15   :  { %s640_s0 = smov [#allocation8]  }
  0x16   :  { %39 = dma.vmem_to_smem %s37_s10, 16, %s640_s0, [#allocation9]  }
  0x17   :  { %617 = dma.done.wait [#allocation7], 16  }
  0x18   :  { %618 = vsyncadd [#allocation7], 4294967280 }
  0x19   :  { %619 = dma.done.wait [#allocation9], 16  }
  0x1a   :  { %620 = vsyncadd [#allocation9], 4294967280 }
  0x1b   :  { %48 = sfence }
  0x1c   :  { %s701_s2 = sld [smem:[#allocation5]]  ;;  %v706_v0 = vld [vmem:[%s861_s3] sm:$0xff]  ;;  %s641_s25 = smov [#allocation2]  }
  0x1d   :  { %s708_s16 = sld [smem:[#allocation5 + $0x1]]  ;;  %v181_v1 = vmul.f32 %v706_v0, %v706_v0  ;;  %s59_s26 = sshll.u32 %s641_s25, 4  ;;  %s729_s26 = int_to_ptr.vmem [resolvable:$true] %s59_s26 }
  0x1e   :  { %s712_s17 = sld [smem:[#allocation5 + $0x2]]  ;;  %s734_s11 = scalar_lea.hbm %s862_s4, 8192 }
  0x1f   :  { %s714_s18 = sld [smem:[#allocation5 + $0x3]]  ;;  %182 = vadd.xlane.f32.xlu0 %v181_v1 }
  0x20   :  { %s49_s19 = sld [smem:[#allocation8]] }
  0x21   :  { %s716_s20 = sld [smem:[#allocation8 + $0x1]] }
  0x22   :  { %s718_s21 = sld [smem:[#allocation8 + $0x2]] }
  0x23   :  { %s720_s22 = sld [smem:[#allocation8 + $0x3]] }
  0x24   :  { %s722_s23 = sld [smem:[#allocation8 + $0x4]] }
  0x25   :  { %s724_s3 = sld [smem:[#allocation8 + $0x5]] }
  0x26   :  { %s353_s24 = sshll.u32 %s49_s19, 4 }
  0x27   :  { %s51_s29 = scalar_lea.hbm %s862_s4, %s353_s24 }
  0x28   :  { %s421_s30 = scalar_lea.hbm %s51_s29, 16  ;;  %p424_p11 = scmp.lt.s32.totalorder %s51_s29, %s862_s4 }
  0x29   :  { %p422_p10 = scmp.ne.s32.totalorder %s51_s29, %s421_s30  ;;  %p425_p12 = scmp.lt.s32.totalorder %s734_s11, %s421_s30 }
  0x2b   :  { %p426_p13 = por %p425_p12, %p424_p11 }
  0x2d   :  { %p427_p0 = pnand %p426_p13, %p422_p10 }
  0x2f   :  { %430 = shalt.err (!%p427_p0)  }
  0x30   :  { %s431_s0 = scalar_lea.vmem %s729_s26, 16  ;;  %s743_s14 = scalar_lea.vmem %s729_s26, 128 }
  0x31   :  { %p432_p1 = scmp.ne.s32.totalorder %s729_s26, %s431_s0  ;;  %p436_p2 = scmp.lt.s32.totalorder %s729_s26, %s729_s26 }
  0x32   :  { %p437_p3 = scmp.lt.s32.totalorder %s743_s14, %s431_s0 }
  0x34   :  { %p438_p4 = por %p437_p3, %p436_p2 }
  0x36   :  { %p439_p5 = pnand %p438_p4, %p432_p1 }
  0x38   :  { %442 = shalt.err (!%p439_p5)  }
  0x39   :  { %62 = dma.hbm_to_vmem [thread:$0]  %s51_s29, 16, %s729_s26, [#allocation3] }
  0x3a   :  { %s355_s15 = sshll.u32 %s716_s20, 4  ;;  %s642_s27 = smov [#allocation2 + $0x1]  }
  0x3b   :  { %s65_s25 = scalar_lea.hbm %s862_s4, %s355_s15  ;;  %s75_s28 = sshll.u32 %s642_s27, 4  ;;  %s76_s28 = int_to_ptr.vmem [resolvable:$true] %s75_s28 }
  0x3c   :  { %s357_s30 = sshll.u32 %s718_s21, 4  ;;  %s443_s9 = scalar_lea.hbm %s65_s25, 16 }
  0x3d   :  { %p444_p6 = scmp.ne.s32.totalorder %s65_s25, %s443_s9  ;;  %p446_p7 = scmp.lt.s32.totalorder %s65_s25, %s862_s4 }
  0x3e   :  { %p447_p8 = scmp.lt.s32.totalorder %s734_s11, %s443_s9 }
  0x40   :  { %p448_p9 = por %p447_p8, %p446_p7 }
  0x42   :  { %p449_p10 = pnand %p448_p9, %p444_p6 }
  0x44   :  { %452 = shalt.err (!%p449_p10)  }
  0x45   :  { %s453_s29 = scalar_lea.vmem %s76_s28, 16  ;;  %p458_p12 = scmp.lt.s32.totalorder %s76_s28, %s729_s26 }
  0x46   :  { %p454_p11 = scmp.ne.s32.totalorder %s76_s28, %s453_s29  ;;  %p459_p13 = scmp.lt.s32.totalorder %s743_s14, %s453_s29 }
  0x48   :  { %p460_p0 = por %p459_p13, %p458_p12 }
  0x4a   :  { %p461_p1 = pnand %p460_p0, %p454_p11 }
  0x4c   :  { %464 = shalt.err (!%p461_p1)  }
  0x4d   :  { %78 = dma.hbm_to_vmem [thread:$0]  %s65_s25, 16, %s76_s28, [#allocation3 + $0x1] }
  0x4e   :  { %s81_s13 = scalar_lea.hbm %s862_s4, %s357_s30  ;;  %s643_s0 = smov [#allocation2 + $0x2]  }
  0x4f   :  { %s91_s15 = sshll.u32 %s643_s0, 4  ;;  %s359_s19 = sshll.u32 %s720_s22, 4  ;;  %s92_s15 = int_to_ptr.vmem [resolvable:$true] %s91_s15 }
  0x50   :  { %s767_s9 = scalar_lea.hbm %s862_s4, %s359_s19  ;;  %s465_s10 = scalar_lea.hbm %s81_s13, 16 }
  0x51   :  { %p466_p2 = scmp.ne.s32.totalorder %s81_s13, %s465_s10  ;;  %p468_p3 = scmp.lt.s32.totalorder %s81_s13, %s862_s4 }
  0x52   :  { %p469_p4 = scmp.lt.s32.totalorder %s734_s11, %s465_s10 }
  0x54   :  { %p470_p5 = por %p469_p4, %p468_p3 }
  0x56   :  { %p471_p6 = pnand %p470_p5, %p466_p2 }
  0x58   :  { %474 = shalt.err (!%p471_p6)  }
  0x59   :  { %s475_s25 = scalar_lea.vmem %s92_s15, 16  ;;  %p480_p8 = scmp.lt.s32.totalorder %s92_s15, %s729_s26 }
  0x5a   :  { %p476_p7 = scmp.ne.s32.totalorder %s92_s15, %s475_s25  ;;  %p481_p9 = scmp.lt.s32.totalorder %s743_s14, %s475_s25 }
  0x5c   :  { %p482_p10 = por %p481_p9, %p480_p8 }
  0x5e   :  { %p483_p11 = pnand %p482_p10, %p476_p7 }
  0x60   :  { %486 = shalt.err (!%p483_p11)  }
  0x61   :  { %94 = dma.hbm_to_vmem [thread:$0]  %s81_s13, 16, %s92_s15, [#allocation3 + $0x2] }
  0x62   :  { %s361_s22 = sshll.u32 %s722_s23, 4  ;;  %s644_s28 = smov [#allocation2 + $0x3]  }
  0x63   :  { %s107_s30 = sshll.u32 %s644_s28, 4  ;;  %s779_s0 = scalar_lea.hbm %s862_s4, %s361_s22  ;;  %s108_s30 = int_to_ptr.vmem [resolvable:$true] %s107_s30 }
  0x64   :  { %s487_s19 = scalar_lea.hbm %s767_s9, 16  ;;  %p490_p13 = scmp.lt.s32.totalorder %s767_s9, %s862_s4 }
  0x65   :  { %p488_p12 = scmp.ne.s32.totalorder %s767_s9, %s487_s19  ;;  %p491_p0 = scmp.lt.s32.totalorder %s734_s11, %s487_s19 }
  0x67   :  { %p492_p1 = por %p491_p0, %p490_p13 }
  0x69   :  { %p493_p2 = pnand %p492_p1, %p488_p12 }
  0x6b   :  { %496 = shalt.err (!%p493_p2)  }
  0x6c   :  { %s497_s13 = scalar_lea.vmem %s108_s30, 16  ;;  %p502_p4 = scmp.lt.s32.totalorder %s108_s30, %s729_s26 }
  0x6d   :  { %p498_p3 = scmp.ne.s32.totalorder %s108_s30, %s497_s13  ;;  %p503_p5 = scmp.lt.s32.totalorder %s743_s14, %s497_s13 }
  0x6f   :  { %p504_p6 = por %p503_p5, %p502_p4 }
  0x71   :  { %p505_p7 = pnand %p504_p6, %p498_p3 }
  0x73   :  { %508 = shalt.err (!%p505_p7)  }
  0x74   :  { %110 = dma.hbm_to_vmem [thread:$0]  %s767_s9, 16, %s108_s30, [#allocation3 + $0x3] }
  0x75   :  { %s645_s23 = smov [#allocation2 + $0x4]   ;;  %s363_s10 = sshll.u32 %s724_s3, 4 }
  0x76   :  { %s123_s15 = sshll.u32 %s645_s23, 4  ;;  %s795_s25 = scalar_lea.hbm %s862_s4, %s363_s10  ;;  %s124_s15 = int_to_ptr.vmem [resolvable:$true] %s123_s15 }
  0x77   :  { %s509_s22 = scalar_lea.hbm %s779_s0, 16  ;;  %p512_p9 = scmp.lt.s32.totalorder %s779_s0, %s862_s4 }
  0x78   :  { %p510_p8 = scmp.ne.s32.totalorder %s779_s0, %s509_s22  ;;  %p513_p10 = scmp.lt.s32.totalorder %s734_s11, %s509_s22 }
  0x7a   :  { %p514_p11 = por %p513_p10, %p512_p9 }
  0x7c   :  { %p515_p12 = pnand %p514_p11, %p510_p8 }
  0x7e   :  { %518 = shalt.err (!%p515_p12)  }
  0x7f   :  { %s519_s9 = scalar_lea.vmem %s124_s15, 16  ;;  %p524_p0 = scmp.lt.s32.totalorder %s124_s15, %s729_s26 }
  0x80   :  { %p520_p13 = scmp.ne.s32.totalorder %s124_s15, %s519_s9  ;;  %p525_p1 = scmp.lt.s32.totalorder %s743_s14, %s519_s9 }
  0x82   :  { %p526_p2 = por %p525_p1, %p524_p0 }
  0x84   :  { %p527_p3 = pnand %p526_p2, %p520_p13 }
  0x86   :  { %530 = shalt.err (!%p527_p3)  }
  0x87   :  { %126 = dma.hbm_to_vmem [thread:$0]  %s779_s0, 16, %s124_s15, [#allocation3 + $0x4] }
  0x88   :  { %s364_s3 = sld [smem:[#allocation8 + $0x6]]  ;;  %s646_s30 = smov [#allocation2 + $0x5]  }
  0x89   :  { %s139_s21 = sshll.u32 %s646_s30, 4  ;;  %s647_s19 = smov [#allocation2 + $0x6]   ;;  %s140_s21 = int_to_ptr.vmem [resolvable:$true] %s139_s21 }
  0x8a   :  { %s155_s24 = sshll.u32 %s647_s19, 4  ;;  %s531_s27 = scalar_lea.hbm %s795_s25, 16  ;;  %s156_s24 = int_to_ptr.vmem [resolvable:$true] %s155_s24 }
  0x8b   :  { %p532_p4 = scmp.ne.s32.totalorder %s795_s25, %s531_s27  ;;  %p534_p5 = scmp.lt.s32.totalorder %s795_s25, %s862_s4 }
  0x8c   :  { %p535_p6 = scmp.lt.s32.totalorder %s734_s11, %s531_s27 }
  0x8e   :  { %p536_p7 = por %p535_p6, %p534_p5 }
  0x90   :  { %p537_p8 = pnand %p536_p7, %p532_p4 }
  0x92   :  { %540 = shalt.err (!%p537_p8)  }
  0x93   :  { %s541_s10 = scalar_lea.vmem %s140_s21, 16  ;;  %p546_p10 = scmp.lt.s32.totalorder %s140_s21, %s729_s26 }
  0x94   :  { %p542_p9 = scmp.ne.s32.totalorder %s140_s21, %s541_s10  ;;  %p547_p11 = scmp.lt.s32.totalorder %s743_s14, %s541_s10 }
  0x96   :  { %p548_p12 = por %p547_p11, %p546_p10 }
  0x98   :  { %p549_p13 = pnand %p548_p12, %p542_p9 }
  0x9a   :  { %552 = shalt.err (!%p549_p13)  }
  0x9b   :  { %142 = dma.hbm_to_vmem [thread:$0]  %s795_s25, 16, %s140_s21, [#allocation3 + $0x5] }
  0x9c   :  { %s366_s0 = sld [smem:[#allocation8 + $0x7]]  ;;  %s365_s15 = sshll.u32 %s364_s3, 4 }
  0x9d   :  { %s648_s12 = smov [#allocation2 + $0x7]   ;;  %s145_s20 = scalar_lea.hbm %s862_s4, %s365_s15 }
  0x9e   :  { %s171_s29 = sshll.u32 %s648_s12, 4  ;;  %s553_s9 = scalar_lea.hbm %s145_s20, 16  ;;  %s172_s29 = int_to_ptr.vmem [resolvable:$true] %s171_s29 }
  0x9f   :  { %p554_p0 = scmp.ne.s32.totalorder %s145_s20, %s553_s9  ;;  %p556_p1 = scmp.lt.s32.totalorder %s145_s20, %s862_s4 }
  0xa0   :  { %p557_p2 = scmp.lt.s32.totalorder %s734_s11, %s553_s9 }
  0xa2   :  { %p558_p3 = por %p557_p2, %p556_p1 }
  0xa4   :  { %p559_p4 = pnand %p558_p3, %p554_p0 }
  0xa6   :  { %562 = shalt.err (!%p559_p4)  }
  0xa7   :  { %s563_s25 = scalar_lea.vmem %s156_s24, 16  ;;  %p568_p6 = scmp.lt.s32.totalorder %s156_s24, %s729_s26 }
  0xa8   :  { %p564_p5 = scmp.ne.s32.totalorder %s156_s24, %s563_s25  ;;  %p569_p7 = scmp.lt.s32.totalorder %s743_s14, %s563_s25 }
  0xaa   :  { %p570_p8 = por %p569_p7, %p568_p6 }
  0xac   :  { %p571_p9 = pnand %p570_p8, %p564_p5 }
  0xae   :  { %574 = shalt.err (!%p571_p9)  }
  0xaf   :  { %158 = dma.hbm_to_vmem [thread:$0]  %s145_s20, 16, %s156_s24, [#allocation3 + $0x6] }
  0xb0   :  { %s367_s3 = sshll.u32 %s366_s0, 4 }
  0xb1   :  { %s161_s13 = scalar_lea.hbm %s862_s4, %s367_s3 }
  0xb2   :  { %s575_s23 = scalar_lea.hbm %s161_s13, 16  ;;  %p578_p11 = scmp.lt.s32.totalorder %s161_s13, %s862_s4 }
  0xb3   :  { %p576_p10 = scmp.ne.s32.totalorder %s161_s13, %s575_s23  ;;  %p579_p12 = scmp.lt.s32.totalorder %s734_s11, %s575_s23 }
  0xb5   :  { %p580_p13 = por %p579_p12, %p578_p11 }
  0xb7   :  { %p581_p0 = pnand %p580_p13, %p576_p10 }
  0xb9   :  { %584 = shalt.err (!%p581_p0)  }
  0xba   :  { %s585_s12 = scalar_lea.vmem %s172_s29, 16  ;;  %p590_p2 = scmp.lt.s32.totalorder %s172_s29, %s729_s26 }
  0xbb   :  { %p586_p1 = scmp.ne.s32.totalorder %s172_s29, %s585_s12  ;;  %p591_p3 = scmp.lt.s32.totalorder %s743_s14, %s585_s12 }
  0xbd   :  { %p592_p4 = por %p591_p3, %p590_p2 }
  0xbf   :  { %p593_p5 = pnand %p592_p4, %p586_p1 }
  0xc1   :  { %596 = shalt.err (!%p593_p5)  }
  0xc2   :  { %174 = dma.hbm_to_vmem [thread:$0]  %s161_s13, 16, %s172_s29, [#allocation3 + $0x7]  ;;  %v183_v2 = vpop.xlane.xlu0 %182 }
  0xc3   :  { %v184_v3 = vmax.f32 %v183_v2, 1e-24 }
  0xc5   :  { %393 = vrsqrt.f32 %v184_v3 }
  0xd2   :  { %v394_v4 = vpop.eup %393 }
  0xd3   :  { %v186_v5 = vmul.f32 %v394_v4, %v706_v0 }
  0xd5   :  { %v187_v6 = vpack.c.bf16 %v186_v5, %v186_v5 }
  0xd7   :  { %188 = vst [vmem:[%s863_s5] sm:$0xf] %v187_v6 }
  0xd8   :  { %621 = dma.done.wait [#allocation3], 16 }
  0xd9   :  { %622 = vsyncadd [#allocation3], 4294967280 }
  0xda   :  { %623 = dma.done.wait [#allocation3 + $0x1], 16 }
  0xdb   :  { %624 = vsyncadd [#allocation3 + $0x1], 4294967280 }
  0xdc   :  { %625 = dma.done.wait [#allocation3 + $0x2], 16 }
  0xdd   :  { %626 = vsyncadd [#allocation3 + $0x2], 4294967280 }
  0xde   :  { %627 = dma.done.wait [#allocation3 + $0x3], 16 }
  0xdf   :  { %628 = vsyncadd [#allocation3 + $0x3], 4294967280 }
  0xe0   :  { %629 = dma.done.wait [#allocation3 + $0x4], 16 }
  0xe1   :  { %630 = vsyncadd [#allocation3 + $0x4], 4294967280 }
  0xe2   :  { %631 = dma.done.wait [#allocation3 + $0x5], 16 }
  0xe3   :  { %632 = vsyncadd [#allocation3 + $0x5], 4294967280 }
  0xe4   :  { %633 = dma.done.wait [#allocation3 + $0x6], 16 }
  0xe5   :  { %634 = vsyncadd [#allocation3 + $0x6], 4294967280 }
  0xe6   :  { %635 = dma.done.wait [#allocation3 + $0x7], 16 }
  0xe7   :  { %636 = vsyncadd [#allocation3 + $0x7], 4294967280  ;;  %v206_v7 = vld [vmem:[#allocation2] sm:$0xff]  ;;  %vm232_vm0 = vcmask 7168   ;;  %v222_v17 = vstv %s701_s2  ;;  %v224_v18 = vstv %s708_s16  ;;  %v229_v21 = vstv %s714_s18  ;;  %s247_s14 = smul.f32 0.99, %s859_s1 }
  0xe8   :  { %v207_v8 = vmul.f32 %v206_v7, %v186_v5  ;;  %v227_v23 = vstv %s712_s17  ;;  %s649_s29 = smov [#allocation10]   ;;  %vm252_vm4 = vcmask 0  }
  0xe9   :  { %s266_s22 = sshll.u32 %s649_s29, 4  ;;  %s267_s22 = int_to_ptr.vmem [resolvable:$true] %s266_s22 }
  0xea   :  { %208 = vadd.xlane.f32.xlu0 %v207_v8  ;;  %s601_s20 = scalar_lea.vmem %s267_s22, 32  ;;  %p602_p7 = scmp.lt.s32.totalorder %s267_s22, %s267_s22 }
 0x173   :  { %v209_v9 = vpop.xlane.xlu0 %208 }
 0x174   :  { %v371_v10 = vclamps-f32 %v209_v9, 1.0 }
 0x176   :  { %v212_v11 = vmul.f32 %v371_v10, %v371_v10  ;;  %v233_v12 = vsel %vm232_vm0, %v371_v10, 0.0  ;;  %v223_v24 = vmul.f32 %v371_v10, %v222_v17  ;;  %v230_v27 = vsub.f32 %v371_v10, %v229_v21 }
 0x177   :  { %234 = vadd.xlane.f32.xlu0 %v233_v12  ;;  %vm228_vm3 = vcmp.gt.f32.partialorder %v371_v10, %v227_v23 }
 0x178   :  { %v213_v13 = vsub.f32 1.0, %v212_v11 }
 0x17a   :  { %v214_v14 = vmax.f32 %v213_v13, 0.0 }
 0x17c   :  { %395 = vrsqrt.f32 %v214_v14  ;;  %vm217_vm1 = vcmp.eq.f32.partialorder %v214_v14, inf  ;;  %v220_v19 = vand.u32 2147483648, %v214_v14  ;;  %vm219_vm2 = vcmp.eq.f32.partialorder %v214_v14, 0.0 }
 0x189   :  { %v396_v15 = vpop.eup %395 }
 0x18a   :  { %v216_v16 = vmul.f32 %v396_v15, %v214_v14 }
 0x18c   :  { %v218_v20 = vsel %vm217_vm1, %v214_v14, %v216_v16 }
 0x18d   :  { %v221_v22 = vsel %vm219_vm2, %v220_v19, %v218_v20 }
 0x18e   :  { %v225_v25 = vmul.f32 %v224_v18, %v221_v22 }
 0x190   :  { %v226_v26 = vsub.f32 %v223_v24, %v225_v25 }
 0x192   :  { %v231_v28 = vsel %vm228_vm3, %v226_v26, %v230_v27  ;;  %249 = vst.msk [vmem:[%s864_s6] sm:$0xff] %vm232_vm0, %v226_v26 }
 0x193   :  { %250 = vst.msk [vmem:[%s865_s7] sm:$0xff] %vm232_vm0, %v231_v28  ;;  %s597_s7 = scalar_lea.vmem %s267_s22, 16 }
 0x194   :  { %p598_p6 = scmp.ne.s32.totalorder %s267_s22, %s597_s7  ;;  %p603_p8 = scmp.lt.s32.totalorder %s601_s20, %s597_s7 }
 0x196   :  { %p604_p9 = por %p603_p8, %p602_p7 }
 0x198   :  { %p605_p10 = pnand %p604_p9, %p598_p6 }
 0x200   :  { %v235_v29 = vpop.xlane.xlu0 %234 }
 0x201   :  { %v236_v30 = vrot.slane %v235_v29, 4 }
 0x203   :  { %v237_v31 = vadd.f32 %v236_v30, %v235_v29 }
 0x205   :  { %v238_v32 = vrot.slane %v237_v31, 2 }
 0x207   :  { %v239_v33 = vadd.f32 %v238_v32, %v237_v31 }
 0x209   :  { %v240_v34 = vrot.slane %v239_v33, 1 }
 0x20b   :  { %v241_v35 = vadd.f32 %v240_v34, %v239_v33 }
 0x20d   :  { %380 = vpush %v241_v35 }
 0x23e   :  { %s381_s24 = spop %380 }
 0x23f   :  { %s245_s0 = smul.f32 0.125, %s381_s24 }
 0x241   :  { %s246_s6 = smul.f32 0.01, %s245_s0 }
 0x243   :  { %s248_s28 = sadd.f32 %s247_s14, %s246_s6 }
 0x245   :  { %v251_v36 = vstv %s248_s28 }
 0x246   :  { %253 = vst.msk [vmem:[#allocation10] sm:$0x1] %vm252_vm4, %v251_v36 }
 0x247   :  { %608 = shalt.err (!%p605_p10)
}
 0x248   :  { %269 = dma.vmem_to_hbm [thread:$0]  %s267_s22, 16, %s866_s8, [#allocation6]  }
 0x249   :  { %637 = dma.done.wait [#allocation6], 16  }
 0x24a   :  { %638 = vsyncadd [#allocation6], 4294967280 }
 0x24b   :  { %279 = vsyncpa [#allocation6], 1 }
 0x24c   :  { %280 = vsyncpa [#allocation7], 1 }
 0x24d   :  { %281 = vsyncpa [#allocation9], 1 }
 0x24e   :  { %282 = vsyncmov [#allocation3] }
 0x251   :  { %s283_s30 = vpop.sfrf %282 }
 0x252   :  { %p372_p11 = scmp.ne.s32.totalorder %s283_s30, 0 }
 0x254   :  { %287 = shalt.err (%p372_p11)  }
 0x255   :  { %289 = vsyncmov [#allocation3 + $0x1] }
 0x258   :  { %s290_s19 = vpop.sfrf %289 }
 0x259   :  { %p373_p12 = scmp.ne.s32.totalorder %s290_s19, 0 }
 0x25b   :  { %294 = shalt.err (%p373_p12)  }
 0x25c   :  { %296 = vsyncmov [#allocation3 + $0x2] }
 0x25f   :  { %s297_s25 = vpop.sfrf %296 }
 0x260   :  { %p374_p13 = scmp.ne.s32.totalorder %s297_s25, 0 }
 0x262   :  { %301 = shalt.err (%p374_p13)  }
 0x263   :  { %303 = vsyncmov [#allocation3 + $0x3] }
 0x266   :  { %s304_s3 = vpop.sfrf %303 }
 0x267   :  { %p375_p0 = scmp.ne.s32.totalorder %s304_s3, 0 }
 0x269   :  { %308 = shalt.err (%p375_p0)  }
 0x26a   :  { %310 = vsyncmov [#allocation3 + $0x4] }
 0x26d   :  { %s311_s8 = vpop.sfrf %310 }
 0x26e   :  { %p376_p1 = scmp.ne.s32.totalorder %s311_s8, 0 }
 0x270   :  { %315 = shalt.err (%p376_p1)  }
 0x271   :  { %317 = vsyncmov [#allocation3 + $0x5] }
 0x274   :  { %s318_s21 = vpop.sfrf %317 }
 0x275   :  { %p377_p2 = scmp.ne.s32.totalorder %s318_s21, 0 }
 0x277   :  { %322 = shalt.err (%p377_p2)  }
 0x278   :  { %324 = vsyncmov [#allocation3 + $0x6] }
 0x27b   :  { %s325_s27 = vpop.sfrf %324 }
 0x27c   :  { %p378_p3 = scmp.ne.s32.totalorder %s325_s27, 0 }
 0x27e   :  { %329 = shalt.err (%p378_p3)  }
 0x27f   :  { %331 = vsyncmov [#allocation3 + $0x7] }
 0x282   :  { %s332_s13 = vpop.sfrf %331 }
 0x283   :  { %p379_p4 = scmp.ne.s32.totalorder %s332_s13, 0 }
 0x285   :  { %336 = shalt.err (%p379_p4)  }

</bundles_post_ra>
